<compile_context>
chip_gen: v7x
topology: tpu7x:2x2x1
jax: 0.10.0
libtpu: 0.0.40
codegen_flags: <defaults>
</compile_context>

<pallas_src>
import functools
import math

import jax
import jax.numpy as jnp
from jax.experimental import pallas as pl
from jax.experimental.pallas import tpu as pltpu  # noqa: F401  (TPU backend)

# ---- small BERT config (shapes consistent with BertConfig(vocab_size=31090)) ----
VOCAB = 31090
HIDDEN = 32
N_LAYERS = 2
N_HEADS = 4
HEAD_DIM = HIDDEN // N_HEADS
INTER = 64
MAX_POS = 64
TYPE_VOCAB = 2
LN_EPS = 1e-12
ATTN_SCALE = 1.0 / math.sqrt(HEAD_DIM)


# ----------------------------- in-kernel helpers -----------------------------

def _layernorm(x, g, b):
    mu = jnp.mean(x, axis=-1, keepdims=True)
    xc = x - mu
    var = jnp.mean(xc * xc, axis=-1, keepdims=True)
    return xc * jax.lax.rsqrt(var + LN_EPS) * g + b


def _gelu(x):
    # TODO(synk): HF BERT default is the exact erf-based GELU; tanh approximation
    # is used since it has a guaranteed Mosaic lowering (differs at ~1e-3 level).
    c = math.sqrt(2.0 / math.pi)
    return 0.5 * x * (1.0 + jnp.tanh(c * (x + 0.044715 * x * x * x)))


# ----------------------------- fused encoder kernel -----------------------------

def _encoder_kernel(emb_ref, mask_ref,
                    eg_ref, eb_ref,
                    qkvw_ref, qkvb_ref, aow_ref, aob_ref, alng_ref, alnb_ref,
                    iw_ref, ib_ref, ow_ref, ob_ref, flng_ref, flnb_ref,
                    pw_ref, pb_ref,
                    pooled_ref, hidden_ref, *, batch, seq):
    bs = batch * seq

    # --- embedding LayerNorm ---
    x = _layernorm(emb_ref[...], eg_ref[...], eb_ref[...])          # (BS, HIDDEN)

    # Hoisted: broadcast the additive mask bias to (B, S, S) ONCE.
    bias_bqk = jnp.broadcast_to(mask_ref[...], (batch, seq, seq))   # (B, S, S)

    # --- transformer layers (static unroll; weights indexed by layer) ---
    for l in range(N_LAYERS):
        # fused QKV projection: one (BS,32)x(32,96) GEMM instead of three.
        qkv = jnp.dot(x, qkvw_ref[l],
                      preferred_element_type=jnp.float32) + qkvb_ref[l]
        # fold 1/sqrt(head_dim) into Q once per layer (instead of per-head scores)
        q3 = (qkv[:, 0 * HIDDEN:1 * HIDDEN] * ATTN_SCALE).reshape(batch, seq, HIDDEN)
        k3 = qkv[:, 1 * HIDDEN:2 * HIDDEN].reshape(batch, seq, HIDDEN)
        v3 = qkv[:, 2 * HIDDEN:3 * HIDDEN].reshape(batch, seq, HIDDEN)

        # per-head softmax attention, entirely VMEM/vreg resident
        ctx_heads = []
        for h in range(N_HEADS):
            sl = slice(h * HEAD_DIM, (h + 1) * HEAD_DIM)
            s = jnp.einsum("bqd,bkd->bqk", q3[:, :, sl], k3[:, :, sl],
                           preferred_element_type=jnp.float32) + bias_bqk
            m = jnp.max(s, axis=-1, keepdims=True)
            p = jnp.exp(s - m)
            denom = jnp.sum(p, axis=-1, keepdims=True)
            p = p * pl.reciprocal(denom, approx=True)
            ch = jnp.einsum("bqk,bkd->bqd", p, v3[:, :, sl],
                            preferred_element_type=jnp.float32)
            ctx_heads.append(ch.reshape(bs, HEAD_DIM))
        ctx = jnp.concatenate(ctx_heads, axis=-1)                    # (BS, HIDDEN)

        attn_out = jnp.dot(ctx, aow_ref[l],
                           preferred_element_type=jnp.float32) + aob_ref[l]
        x = _layernorm(attn_out + x, alng_ref[l], alnb_ref[l])

        inter = _gelu(jnp.dot(x, iw_ref[l],
                              preferred_element_type=jnp.float32) + ib_ref[l])
        ffn_out = jnp.dot(inter, ow_ref[l],
                          preferred_element_type=jnp.float32) + ob_ref[l]
        x = _layernorm(ffn_out + x, flng_ref[l], flnb_ref[l])

    hidden_ref[...] = x                                              # last_hidden_state

    # --- pooler: tanh(cls @ W + b), cls rows already resident in VMEM ---
    cls = x.reshape(batch, seq, HIDDEN)[:, 0, :]                     # (B, HIDDEN)
    pooled_ref[...] = jnp.tanh(
        jnp.dot(cls, pw_ref[...], preferred_element_type=jnp.float32) + pb_ref[...])


# ----------------------------- parameter setup -----------------------------

def init_params(key):
    def normal(k, shape):
        return 0.02 * jax.random.normal(k, shape, dtype=jnp.float32)

    keys = iter(jax.random.split(key, 16))
    return {
        "word_emb": normal(next(keys), (VOCAB, HIDDEN)),
        "pos_emb": normal(next(keys), (MAX_POS, HIDDEN)),
        "type_emb": normal(next(keys), (TYPE_VOCAB, HIDDEN)),
        "emb_ln_g": jnp.ones((1, HIDDEN), jnp.float32),
        "emb_ln_b": jnp.zeros((1, HIDDEN), jnp.float32),
        # per-layer weights stacked along a leading layer axis; Q/K/V concatenated
        # into a single (HIDDEN, 3*HIDDEN) projection per layer.
        "qkv_w": normal(next(keys), (N_LAYERS, HIDDEN, 3 * HIDDEN)),
        "qkv_b": jnp.zeros((N_LAYERS, 1, 3 * HIDDEN), jnp.float32),
        "ao_w": normal(next(keys), (N_LAYERS, HIDDEN, HIDDEN)),
        "ao_b": jnp.zeros((N_LAYERS, 1, HIDDEN), jnp.float32),
        "attn_ln_g": jnp.ones((N_LAYERS, 1, HIDDEN), jnp.float32),
        "attn_ln_b": jnp.zeros((N_LAYERS, 1, HIDDEN), jnp.float32),
        "i_w": normal(next(keys), (N_LAYERS, HIDDEN, INTER)),
        "i_b": jnp.zeros((N_LAYERS, 1, INTER), jnp.float32),
        "o_w": normal(next(keys), (N_LAYERS, INTER, HIDDEN)),
        "o_b": jnp.zeros((N_LAYERS, 1, HIDDEN), jnp.float32),
        "ffn_ln_g": jnp.ones((N_LAYERS, 1, HIDDEN), jnp.float32),
        "ffn_ln_b": jnp.zeros((N_LAYERS, 1, HIDDEN), jnp.float32),
        "pool_w": normal(next(keys), (HIDDEN, HIDDEN)),
        "pool_b": jnp.zeros((1, HIDDEN), jnp.float32),
    }


# ----------------------------- forward pass -----------------------------

@functools.partial(jax.jit, static_argnames=("return_cls",))
def momu_text_encoder_forward(params, input_ids, token_type_ids, attention_mask,
                              return_cls=True):
    """Equivalent of MoMuTextEncoder.forward({'input_ids', 'token_type_ids',
    'attention_mask'}, return_cls=True) with dropout=0.0, use_num_layers=-1."""
    B, S = input_ids.shape

    # Embeddings (gather is XLA glue); LayerNorm + encoder run inside the kernel.
    pos_ids = jnp.arange(S, dtype=jnp.int32)[None, :]
    emb = (jnp.take(params["word_emb"], input_ids, axis=0)
           + jnp.take(params["pos_emb"], pos_ids, axis=0)
           + jnp.take(params["type_emb"], token_type_ids, axis=0)
           ).reshape(B * S, HIDDEN).astype(jnp.float32)

    # Extended attention mask: (1 - mask) * -10000, additive bias, (B, 1, S).
    mask_bias = ((1.0 - attention_mask.astype(jnp.float32)) * -10000.0
                 ).reshape(B, 1, S)

    pooled, hidden = pl.pallas_call(
        functools.partial(_encoder_kernel, batch=B, seq=S),
        out_shape=(jax.ShapeDtypeStruct((B, HIDDEN), jnp.float32),
                   jax.ShapeDtypeStruct((B * S, HIDDEN), jnp.float32)),
    )(emb, mask_bias,
      params["emb_ln_g"], params["emb_ln_b"],
      params["qkv_w"], params["qkv_b"],
      params["ao_w"], params["ao_b"],
      params["attn_ln_g"], params["attn_ln_b"],
      params["i_w"], params["i_b"],
      params["o_w"], params["o_b"],
      params["ffn_ln_g"], params["ffn_ln_b"],
      params["pool_w"], params["pool_b"])

    if return_cls:
        return pooled                       # dropout(0.0) == identity
    return hidden.reshape(B, S, HIDDEN)     # last_hidden_state path


# ----------------------------- main -----------------------------

if __name__ == "__main__":
    B, S = 2, 8
    key = jax.random.PRNGKey(0)
    pkey, ikey = jax.random.split(key)
    params = init_params(pkey)

    input_ids = jax.random.randint(ikey, (B, S), 0, VOCAB, dtype=jnp.int32)
    token_type_ids = jnp.zeros((B, S), jnp.int32)
    attention_mask = jnp.ones((B, S), jnp.int32)
    # make the last two tokens of batch 1 padding to exercise the mask
    attention_mask = attention_mask.at[1, -2:].set(0)

    out = momu_text_encoder_forward(params, input_ids, token_type_ids,
                                    attention_mask, return_cls=True)
    out = jax.block_until_ready(out)

    assert out.shape == (B, HIDDEN)
    assert bool(jnp.all(jnp.isfinite(out)))
    print("KERNEL_OK")
</pallas_src>

<mosaic_0001>
module attributes {stable_mosaic.version = 11 : i64} {
  func.func @_encoder_kernel(%arg0: memref<16x32xf32, #tpu.memory_space<vmem>>, %arg1: memref<2x1x8xf32, #tpu.memory_space<vmem>>, %arg2: memref<1x32xf32, #tpu.memory_space<vmem>>, %arg3: memref<1x32xf32, #tpu.memory_space<vmem>>, %arg4: memref<2x32x96xf32, #tpu.memory_space<vmem>>, %arg5: memref<2x1x96xf32, #tpu.memory_space<vmem>>, %arg6: memref<2x32x32xf32, #tpu.memory_space<vmem>>, %arg7: memref<2x1x32xf32, #tpu.memory_space<vmem>>, %arg8: memref<2x1x32xf32, #tpu.memory_space<vmem>>, %arg9: memref<2x1x32xf32, #tpu.memory_space<vmem>>, %arg10: memref<2x32x64xf32, #tpu.memory_space<vmem>>, %arg11: memref<2x1x64xf32, #tpu.memory_space<vmem>>, %arg12: memref<2x64x32xf32, #tpu.memory_space<vmem>>, %arg13: memref<2x1x32xf32, #tpu.memory_space<vmem>>, %arg14: memref<2x1x32xf32, #tpu.memory_space<vmem>>, %arg15: memref<2x1x32xf32, #tpu.memory_space<vmem>>, %arg16: memref<32x32xf32, #tpu.memory_space<vmem>>, %arg17: memref<1x32xf32, #tpu.memory_space<vmem>>, %arg18: memref<2x32xf32, #tpu.memory_space<vmem>>, %arg19: memref<16x32xf32, #tpu.memory_space<vmem>>) attributes {dimension_semantics = [], scalar_prefetch = 0 : i64, scratch_operands = 0 : i64, tpu.core_type = #tpu.core_type<tc>} {
    %c0 = arith.constant 0 : index
    %c0_0 = arith.constant 0 : index
    %0 = vector.load %arg0[%c0, %c0_0] : memref<16x32xf32, #tpu.memory_space<vmem>>, vector<16x32xf32>
    %c0_1 = arith.constant 0 : index
    %c0_2 = arith.constant 0 : index
    %1 = vector.load %arg2[%c0_1, %c0_2] : memref<1x32xf32, #tpu.memory_space<vmem>>, vector<1x32xf32>
    %c0_3 = arith.constant 0 : index
    %c0_4 = arith.constant 0 : index
    %2 = vector.load %arg3[%c0_3, %c0_4] : memref<1x32xf32, #tpu.memory_space<vmem>>, vector<1x32xf32>
    %cst = arith.constant dense<0.000000e+00> : vector<16xf32>
    %3 = vector.multi_reduction <add>, %0, %cst [1] : vector<16x32xf32> to vector<16xf32>
    %4 = vector.shape_cast %3 : vector<16xf32> to vector<16x1xf32>
    %cst_5 = arith.constant 3.200000e+01 : f32
    %5 = vector.broadcast %cst_5 : f32 to vector<16x1xf32>
    %6 = arith.divf %4, %5 : vector<16x1xf32>
    %7 = vector.broadcast %6 : vector<16x1xf32> to vector<16x32xf32>
    %8 = arith.subf %0, %7 : vector<16x32xf32>
    %9 = arith.mulf %8, %8 : vector<16x32xf32>
    %cst_6 = arith.constant dense<0.000000e+00> : vector<16xf32>
    %10 = vector.multi_reduction <add>, %9, %cst_6 [1] : vector<16x32xf32> to vector<16xf32>
    %11 = vector.shape_cast %10 : vector<16xf32> to vector<16x1xf32>
    %cst_7 = arith.constant 3.200000e+01 : f32
    %12 = vector.broadcast %cst_7 : f32 to vector<16x1xf32>
    %13 = arith.divf %11, %12 : vector<16x1xf32>
    %cst_8 = arith.constant 9.99999996E-13 : f32
    %14 = vector.broadcast %cst_8 : f32 to vector<16x1xf32>
    %15 = arith.addf %13, %14 : vector<16x1xf32>
    %16 = math.rsqrt %15 : vector<16x1xf32>
    %17 = vector.broadcast %16 : vector<16x1xf32> to vector<16x32xf32>
    %18 = arith.mulf %8, %17 : vector<16x32xf32>
    %19 = vector.broadcast %1 : vector<1x32xf32> to vector<16x32xf32>
    %20 = arith.mulf %18, %19 : vector<16x32xf32>
    %21 = vector.broadcast %2 : vector<1x32xf32> to vector<16x32xf32>
    %22 = arith.addf %20, %21 : vector<16x32xf32>
    %c0_9 = arith.constant 0 : index
    %c0_10 = arith.constant 0 : index
    %c0_11 = arith.constant 0 : index
    %23 = vector.load %arg1[%c0_9, %c0_10, %c0_11] : memref<2x1x8xf32, #tpu.memory_space<vmem>>, vector<2x1x8xf32>
    %24 = vector.shape_cast %23 : vector<2x1x8xf32> to vector<2x1x8xf32>
    %25 = vector.broadcast %24 : vector<2x1x8xf32> to vector<2x8x8xf32>
    %c0_12 = arith.constant 0 : index
    %c0_13 = arith.constant 0 : index
    %c0_14 = arith.constant 0 : index
    %26 = vector.load %arg4[%c0_12, %c0_13, %c0_14] : memref<2x32x96xf32, #tpu.memory_space<vmem>>, vector<1x32x96xf32>
    %27 = vector.shape_cast %26 : vector<1x32x96xf32> to vector<32x96xf32>
    %cst_15 = arith.constant dense<0.000000e+00> : vector<16x96xf32>
    %28 = tpu.matmul %22, %27, %cst_15 {dimension_numbers = #tpu.dot_dimension_numbers<[1], [0], [0], [1], [0, 0, 1, 1], [], []>} : vector<16x32xf32>, vector<32x96xf32>, vector<16x96xf32> -> vector<16x96xf32>
    %c0_16 = arith.constant 0 : index
    %c0_17 = arith.constant 0 : index
    %c0_18 = arith.constant 0 : index
    %29 = vector.load %arg5[%c0_16, %c0_17, %c0_18] : memref<2x1x96xf32, #tpu.memory_space<vmem>>, vector<1x1x96xf32>
    %30 = vector.shape_cast %29 : vector<1x1x96xf32> to vector<1x96xf32>
    %31 = vector.broadcast %30 : vector<1x96xf32> to vector<16x96xf32>
    %32 = arith.addf %28, %31 : vector<16x96xf32>
    %33 = vector.extract_strided_slice %32 {offsets = [0, 0], sizes = [16, 32], strides = [1, 1]} : vector<16x96xf32> to vector<16x32xf32>
    %cst_19 = arith.constant 0.353553385 : f32
    %34 = vector.broadcast %cst_19 : f32 to vector<16x32xf32>
    %35 = arith.mulf %33, %34 : vector<16x32xf32>
    %36 = vector.shape_cast %35 : vector<16x32xf32> to vector<2x8x32xf32>
    %37 = vector.extract_strided_slice %32 {offsets = [0, 32], sizes = [16, 32], strides = [1, 1]} : vector<16x96xf32> to vector<16x32xf32>
    %38 = vector.shape_cast %37 : vector<16x32xf32> to vector<2x8x32xf32>
    %39 = vector.extract_strided_slice %32 {offsets = [0, 64], sizes = [16, 32], strides = [1, 1]} : vector<16x96xf32> to vector<16x32xf32>
    %40 = vector.shape_cast %39 : vector<16x32xf32> to vector<2x8x32xf32>
    %41 = vector.extract_strided_slice %36 {offsets = [0, 0, 0], sizes = [2, 8, 8], strides = [1, 1, 1]} : vector<2x8x32xf32> to vector<2x8x8xf32>
    %42 = vector.extract_strided_slice %38 {offsets = [0, 0, 0], sizes = [2, 8, 8], strides = [1, 1, 1]} : vector<2x8x32xf32> to vector<2x8x8xf32>
    "tpu.trace_start"() <{level = 10 : i32, message = "bqd,bkd->bqk"}> : () -> ()
    %cst_20 = arith.constant dense<0.000000e+00> : vector<2x8x8xf32>
    %43 = tpu.matmul %41, %42, %cst_20 {dimension_numbers = #tpu.dot_dimension_numbers<[2], [2], [1], [1], [0, 0, 0, 1, 1, 1], [0], [0]>} : vector<2x8x8xf32>, vector<2x8x8xf32>, vector<2x8x8xf32> -> vector<2x8x8xf32>
    "tpu.trace_stop"() : () -> ()
    %44 = arith.addf %43, %25 : vector<2x8x8xf32>
    %cst_21 = arith.constant dense<0xFF800000> : vector<2x8xf32>
    %45 = vector.multi_reduction <maximumf>, %44, %cst_21 [2] : vector<2x8x8xf32> to vector<2x8xf32>
    %46 = vector.shape_cast %45 : vector<2x8xf32> to vector<2x8x1xf32>
    %47 = vector.broadcast %46 : vector<2x8x1xf32> to vector<2x8x8xf32>
    %48 = arith.subf %44, %47 : vector<2x8x8xf32>
    %49 = math.exp %48 : vector<2x8x8xf32>
    %cst_22 = arith.constant dense<0.000000e+00> : vector<2x8xf32>
    %50 = vector.multi_reduction <add>, %49, %cst_22 [2] : vector<2x8x8xf32> to vector<2x8xf32>
    %51 = vector.shape_cast %50 : vector<2x8xf32> to vector<2x8x1xf32>
    %52 = tpu.reciprocal %51 {approx = true} : vector<2x8x1xf32> -> vector<2x8x1xf32>
    %53 = vector.broadcast %52 : vector<2x8x1xf32> to vector<2x8x8xf32>
    %54 = arith.mulf %49, %53 : vector<2x8x8xf32>
    %55 = vector.extract_strided_slice %40 {offsets = [0, 0, 0], sizes = [2, 8, 8], strides = [1, 1, 1]} : vector<2x8x32xf32> to vector<2x8x8xf32>
    "tpu.trace_start"() <{level = 10 : i32, message = "bqk,bkd->bqd"}> : () -> ()
    %cst_23 = arith.constant dense<0.000000e+00> : vector<2x8x8xf32>
    %56 = tpu.matmul %54, %55, %cst_23 {dimension_numbers = #tpu.dot_dimension_numbers<[2], [1], [1], [2], [0, 0, 0, 1, 1, 2], [0], [0]>} : vector<2x8x8xf32>, vector<2x8x8xf32>, vector<2x8x8xf32> -> vector<2x8x8xf32>
    "tpu.trace_stop"() : () -> ()
    %57 = vector.shape_cast %56 : vector<2x8x8xf32> to vector<16x8xf32>
    %58 = vector.extract_strided_slice %36 {offsets = [0, 0, 8], sizes = [2, 8, 8], strides = [1, 1, 1]} : vector<2x8x32xf32> to vector<2x8x8xf32>
    %59 = vector.extract_strided_slice %38 {offsets = [0, 0, 8], sizes = [2, 8, 8], strides = [1, 1, 1]} : vector<2x8x32xf32> to vector<2x8x8xf32>
    "tpu.trace_start"() <{level = 10 : i32, message = "bqd,bkd->bqk"}> : () -> ()
    %cst_24 = arith.constant dense<0.000000e+00> : vector<2x8x8xf32>
    %60 = tpu.matmul %58, %59, %cst_24 {dimension_numbers = #tpu.dot_dimension_numbers<[2], [2], [1], [1], [0, 0, 0, 1, 1, 1], [0], [0]>} : vector<2x8x8xf32>, vector<2x8x8xf32>, vector<2x8x8xf32> -> vector<2x8x8xf32>
    "tpu.trace_stop"() : () -> ()
    %61 = arith.addf %60, %25 : vector<2x8x8xf32>
    %cst_25 = arith.constant dense<0xFF800000> : vector<2x8xf32>
    %62 = vector.multi_reduction <maximumf>, %61, %cst_25 [2] : vector<2x8x8xf32> to vector<2x8xf32>
    %63 = vector.shape_cast %62 : vector<2x8xf32> to vector<2x8x1xf32>
    %64 = vector.broadcast %63 : vector<2x8x1xf32> to vector<2x8x8xf32>
    %65 = arith.subf %61, %64 : vector<2x8x8xf32>
    %66 = math.exp %65 : vector<2x8x8xf32>
    %cst_26 = arith.constant dense<0.000000e+00> : vector<2x8xf32>
    %67 = vector.multi_reduction <add>, %66, %cst_26 [2] : vector<2x8x8xf32> to vector<2x8xf32>
    %68 = vector.shape_cast %67 : vector<2x8xf32> to vector<2x8x1xf32>
    %69 = tpu.reciprocal %68 {approx = true} : vector<2x8x1xf32> -> vector<2x8x1xf32>
    %70 = vector.broadcast %69 : vector<2x8x1xf32> to vector<2x8x8xf32>
    %71 = arith.mulf %66, %70 : vector<2x8x8xf32>
    %72 = vector.extract_strided_slice %40 {offsets = [0, 0, 8], sizes = [2, 8, 8], strides = [1, 1, 1]} : vector<2x8x32xf32> to vector<2x8x8xf32>
    "tpu.trace_start"() <{level = 10 : i32, message = "bqk,bkd->bqd"}> : () -> ()
    %cst_27 = arith.constant dense<0.000000e+00> : vector<2x8x8xf32>
    %73 = tpu.matmul %71, %72, %cst_27 {dimension_numbers = #tpu.dot_dimension_numbers<[2], [1], [1], [2], [0, 0, 0, 1, 1, 2], [0], [0]>} : vector<2x8x8xf32>, vector<2x8x8xf32>, vector<2x8x8xf32> -> vector<2x8x8xf32>
    "tpu.trace_stop"() : () -> ()
    %74 = vector.shape_cast %73 : vector<2x8x8xf32> to vector<16x8xf32>
    %75 = vector.extract_strided_slice %36 {offsets = [0, 0, 16], sizes = [2, 8, 8], strides = [1, 1, 1]} : vector<2x8x32xf32> to vector<2x8x8xf32>
    %76 = vector.extract_strided_slice %38 {offsets = [0, 0, 16], sizes = [2, 8, 8], strides = [1, 1, 1]} : vector<2x8x32xf32> to vector<2x8x8xf32>
    "tpu.trace_start"() <{level = 10 : i32, message = "bqd,bkd->bqk"}> : () -> ()
    %cst_28 = arith.constant dense<0.000000e+00> : vector<2x8x8xf32>
    %77 = tpu.matmul %75, %76, %cst_28 {dimension_numbers = #tpu.dot_dimension_numbers<[2], [2], [1], [1], [0, 0, 0, 1, 1, 1], [0], [0]>} : vector<2x8x8xf32>, vector<2x8x8xf32>, vector<2x8x8xf32> -> vector<2x8x8xf32>
    "tpu.trace_stop"() : () -> ()
    %78 = arith.addf %77, %25 : vector<2x8x8xf32>
    %cst_29 = arith.constant dense<0xFF800000> : vector<2x8xf32>
    %79 = vector.multi_reduction <maximumf>, %78, %cst_29 [2] : vector<2x8x8xf32> to vector<2x8xf32>
    %80 = vector.shape_cast %79 : vector<2x8xf32> to vector<2x8x1xf32>
    %81 = vector.broadcast %80 : vector<2x8x1xf32> to vector<2x8x8xf32>
    %82 = arith.subf %78, %81 : vector<2x8x8xf32>
    %83 = math.exp %82 : vector<2x8x8xf32>
    %cst_30 = arith.constant dense<0.000000e+00> : vector<2x8xf32>
    %84 = vector.multi_reduction <add>, %83, %cst_30 [2] : vector<2x8x8xf32> to vector<2x8xf32>
    %85 = vector.shape_cast %84 : vector<2x8xf32> to vector<2x8x1xf32>
    %86 = tpu.reciprocal %85 {approx = true} : vector<2x8x1xf32> -> vector<2x8x1xf32>
    %87 = vector.broadcast %86 : vector<2x8x1xf32> to vector<2x8x8xf32>
    %88 = arith.mulf %83, %87 : vector<2x8x8xf32>
    %89 = vector.extract_strided_slice %40 {offsets = [0, 0, 16], sizes = [2, 8, 8], strides = [1, 1, 1]} : vector<2x8x32xf32> to vector<2x8x8xf32>
    "tpu.trace_start"() <{level = 10 : i32, message = "bqk,bkd->bqd"}> : () -> ()
    %cst_31 = arith.constant dense<0.000000e+00> : vector<2x8x8xf32>
    %90 = tpu.matmul %88, %89, %cst_31 {dimension_numbers = #tpu.dot_dimension_numbers<[2], [1], [1], [2], [0, 0, 0, 1, 1, 2], [0], [0]>} : vector<2x8x8xf32>, vector<2x8x8xf32>, vector<2x8x8xf32> -> vector<2x8x8xf32>
    "tpu.trace_stop"() : () -> ()
    %91 = vector.shape_cast %90 : vector<2x8x8xf32> to vector<16x8xf32>
    %92 = vector.extract_strided_slice %36 {offsets = [0, 0, 24], sizes = [2, 8, 8], strides = [1, 1, 1]} : vector<2x8x32xf32> to vector<2x8x8xf32>
    %93 = vector.extract_strided_slice %38 {offsets = [0, 0, 24], sizes = [2, 8, 8], strides = [1, 1, 1]} : vector<2x8x32xf32> to vector<2x8x8xf32>
    "tpu.trace_start"() <{level = 10 : i32, message = "bqd,bkd->bqk"}> : () -> ()
    %cst_32 = arith.constant dense<0.000000e+00> : vector<2x8x8xf32>
    %94 = tpu.matmul %92, %93, %cst_32 {dimension_numbers = #tpu.dot_dimension_numbers<[2], [2], [1], [1], [0, 0, 0, 1, 1, 1], [0], [0]>} : vector<2x8x8xf32>, vector<2x8x8xf32>, vector<2x8x8xf32> -> vector<2x8x8xf32>
    "tpu.trace_stop"() : () -> ()
    %95 = arith.addf %94, %25 : vector<2x8x8xf32>
    %cst_33 = arith.constant dense<0xFF800000> : vector<2x8xf32>
    %96 = vector.multi_reduction <maximumf>, %95, %cst_33 [2] : vector<2x8x8xf32> to vector<2x8xf32>
    %97 = vector.shape_cast %96 : vector<2x8xf32> to vector<2x8x1xf32>
    %98 = vector.broadcast %97 : vector<2x8x1xf32> to vector<2x8x8xf32>
    %99 = arith.subf %95, %98 : vector<2x8x8xf32>
    %100 = math.exp %99 : vector<2x8x8xf32>
    %cst_34 = arith.constant dense<0.000000e+00> : vector<2x8xf32>
    %101 = vector.multi_reduction <add>, %100, %cst_34 [2] : vector<2x8x8xf32> to vector<2x8xf32>
    %102 = vector.shape_cast %101 : vector<2x8xf32> to vector<2x8x1xf32>
    %103 = tpu.reciprocal %102 {approx = true} : vector<2x8x1xf32> -> vector<2x8x1xf32>
    %104 = vector.broadcast %103 : vector<2x8x1xf32> to vector<2x8x8xf32>
    %105 = arith.mulf %100, %104 : vector<2x8x8xf32>
    %106 = vector.extract_strided_slice %40 {offsets = [0, 0, 24], sizes = [2, 8, 8], strides = [1, 1, 1]} : vector<2x8x32xf32> to vector<2x8x8xf32>
    "tpu.trace_start"() <{level = 10 : i32, message = "bqk,bkd->bqd"}> : () -> ()
    %cst_35 = arith.constant dense<0.000000e+00> : vector<2x8x8xf32>
    %107 = tpu.matmul %105, %106, %cst_35 {dimension_numbers = #tpu.dot_dimension_numbers<[2], [1], [1], [2], [0, 0, 0, 1, 1, 2], [0], [0]>} : vector<2x8x8xf32>, vector<2x8x8xf32>, vector<2x8x8xf32> -> vector<2x8x8xf32>
    "tpu.trace_stop"() : () -> ()
    %108 = vector.shape_cast %107 : vector<2x8x8xf32> to vector<16x8xf32>
    %109 = tpu.concatenate %57, %74, %91, %108 in 1 : vector<16x8xf32>, vector<16x8xf32>, vector<16x8xf32>, vector<16x8xf32> -> vector<16x32xf32>
    %c0_36 = arith.constant 0 : index
    %c0_37 = arith.constant 0 : index
    %c0_38 = arith.constant 0 : index
    %110 = vector.load %arg6[%c0_36, %c0_37, %c0_38] : memref<2x32x32xf32, #tpu.memory_space<vmem>>, vector<1x32x32xf32>
    %111 = vector.shape_cast %110 : vector<1x32x32xf32> to vector<32x32xf32>
    %cst_39 = arith.constant dense<0.000000e+00> : vector<16x32xf32>
    %112 = tpu.matmul %109, %111, %cst_39 {dimension_numbers = #tpu.dot_dimension_numbers<[1], [0], [0], [1], [0, 0, 1, 1], [], []>} : vector<16x32xf32>, vector<32x32xf32>, vector<16x32xf32> -> vector<16x32xf32>
    %c0_40 = arith.constant 0 : index
    %c0_41 = arith.constant 0 : index
    %c0_42 = arith.constant 0 : index
    %113 = vector.load %arg7[%c0_40, %c0_41, %c0_42] : memref<2x1x32xf32, #tpu.memory_space<vmem>>, vector<1x1x32xf32>
    %114 = vector.shape_cast %113 : vector<1x1x32xf32> to vector<1x32xf32>
    %115 = vector.broadcast %114 : vector<1x32xf32> to vector<16x32xf32>
    %116 = arith.addf %112, %115 : vector<16x32xf32>
    %117 = arith.addf %116, %22 : vector<16x32xf32>
    %c0_43 = arith.constant 0 : index
    %c0_44 = arith.constant 0 : index
    %c0_45 = arith.constant 0 : index
    %118 = vector.load %arg8[%c0_43, %c0_44, %c0_45] : memref<2x1x32xf32, #tpu.memory_space<vmem>>, vector<1x1x32xf32>
    %119 = vector.shape_cast %118 : vector<1x1x32xf32> to vector<1x32xf32>
    %c0_46 = arith.constant 0 : index
    %c0_47 = arith.constant 0 : index
    %c0_48 = arith.constant 0 : index
    %120 = vector.load %arg9[%c0_46, %c0_47, %c0_48] : memref<2x1x32xf32, #tpu.memory_space<vmem>>, vector<1x1x32xf32>
    %121 = vector.shape_cast %120 : vector<1x1x32xf32> to vector<1x32xf32>
    %cst_49 = arith.constant dense<0.000000e+00> : vector<16xf32>
    %122 = vector.multi_reduction <add>, %117, %cst_49 [1] : vector<16x32xf32> to vector<16xf32>
    %123 = vector.shape_cast %122 : vector<16xf32> to vector<16x1xf32>
    %cst_50 = arith.constant 3.200000e+01 : f32
    %124 = vector.broadcast %cst_50 : f32 to vector<16x1xf32>
    %125 = arith.divf %123, %124 : vector<16x1xf32>
    %126 = vector.broadcast %125 : vector<16x1xf32> to vector<16x32xf32>
    %127 = arith.subf %117, %126 : vector<16x32xf32>
    %128 = arith.mulf %127, %127 : vector<16x32xf32>
    %cst_51 = arith.constant dense<0.000000e+00> : vector<16xf32>
    %129 = vector.multi_reduction <add>, %128, %cst_51 [1] : vector<16x32xf32> to vector<16xf32>
    %130 = vector.shape_cast %129 : vector<16xf32> to vector<16x1xf32>
    %cst_52 = arith.constant 3.200000e+01 : f32
    %131 = vector.broadcast %cst_52 : f32 to vector<16x1xf32>
    %132 = arith.divf %130, %131 : vector<16x1xf32>
    %cst_53 = arith.constant 9.99999996E-13 : f32
    %133 = vector.broadcast %cst_53 : f32 to vector<16x1xf32>
    %134 = arith.addf %132, %133 : vector<16x1xf32>
    %135 = math.rsqrt %134 : vector<16x1xf32>
    %136 = vector.broadcast %135 : vector<16x1xf32> to vector<16x32xf32>
    %137 = arith.mulf %127, %136 : vector<16x32xf32>
    %138 = vector.broadcast %119 : vector<1x32xf32> to vector<16x32xf32>
    %139 = arith.mulf %137, %138 : vector<16x32xf32>
    %140 = vector.broadcast %121 : vector<1x32xf32> to vector<16x32xf32>
    %141 = arith.addf %139, %140 : vector<16x32xf32>
    %c0_54 = arith.constant 0 : index
    %c0_55 = arith.constant 0 : index
    %c0_56 = arith.constant 0 : index
    %142 = vector.load %arg10[%c0_54, %c0_55, %c0_56] : memref<2x32x64xf32, #tpu.memory_space<vmem>>, vector<1x32x64xf32>
    %143 = vector.shape_cast %142 : vector<1x32x64xf32> to vector<32x64xf32>
    %cst_57 = arith.constant dense<0.000000e+00> : vector<16x64xf32>
    %144 = tpu.matmul %141, %143, %cst_57 {dimension_numbers = #tpu.dot_dimension_numbers<[1], [0], [0], [1], [0, 0, 1, 1], [], []>} : vector<16x32xf32>, vector<32x64xf32>, vector<16x64xf32> -> vector<16x64xf32>
    %c0_58 = arith.constant 0 : index
    %c0_59 = arith.constant 0 : index
    %c0_60 = arith.constant 0 : index
    %145 = vector.load %arg11[%c0_58, %c0_59, %c0_60] : memref<2x1x64xf32, #tpu.memory_space<vmem>>, vector<1x1x64xf32>
    %146 = vector.shape_cast %145 : vector<1x1x64xf32> to vector<1x64xf32>
    %147 = vector.broadcast %146 : vector<1x64xf32> to vector<16x64xf32>
    %148 = arith.addf %144, %147 : vector<16x64xf32>
    %cst_61 = arith.constant 5.000000e-01 : f32
    %149 = vector.broadcast %cst_61 : f32 to vector<16x64xf32>
    %150 = arith.mulf %149, %148 : vector<16x64xf32>
    %cst_62 = arith.constant 4.471500e-02 : f32
    %151 = vector.broadcast %cst_62 : f32 to vector<16x64xf32>
    %152 = arith.mulf %151, %148 : vector<16x64xf32>
    %153 = arith.mulf %152, %148 : vector<16x64xf32>
    %154 = arith.mulf %153, %148 : vector<16x64xf32>
    %155 = arith.addf %148, %154 : vector<16x64xf32>
    %cst_63 = arith.constant 0.797884583 : f32
    %156 = vector.broadcast %cst_63 : f32 to vector<16x64xf32>
    %157 = arith.mulf %156, %155 : vector<16x64xf32>
    %158 = math.tanh %157 : vector<16x64xf32>
    %cst_64 = arith.constant 1.000000e+00 : f32
    %159 = vector.broadcast %cst_64 : f32 to vector<16x64xf32>
    %160 = arith.addf %159, %158 : vector<16x64xf32>
    %161 = arith.mulf %150, %160 : vector<16x64xf32>
    %c0_65 = arith.constant 0 : index
    %c0_66 = arith.constant 0 : index
    %c0_67 = arith.constant 0 : index
    %162 = vector.load %arg12[%c0_65, %c0_66, %c0_67] : memref<2x64x32xf32, #tpu.memory_space<vmem>>, vector<1x64x32xf32>
    %163 = vector.shape_cast %162 : vector<1x64x32xf32> to vector<64x32xf32>
    %cst_68 = arith.constant dense<0.000000e+00> : vector<16x32xf32>
    %164 = tpu.matmul %161, %163, %cst_68 {dimension_numbers = #tpu.dot_dimension_numbers<[1], [0], [0], [1], [0, 0, 1, 1], [], []>} : vector<16x64xf32>, vector<64x32xf32>, vector<16x32xf32> -> vector<16x32xf32>
    %c0_69 = arith.constant 0 : index
    %c0_70 = arith.constant 0 : index
    %c0_71 = arith.constant 0 : index
    %165 = vector.load %arg13[%c0_69, %c0_70, %c0_71] : memref<2x1x32xf32, #tpu.memory_space<vmem>>, vector<1x1x32xf32>
    %166 = vector.shape_cast %165 : vector<1x1x32xf32> to vector<1x32xf32>
    %167 = vector.broadcast %166 : vector<1x32xf32> to vector<16x32xf32>
    %168 = arith.addf %164, %167 : vector<16x32xf32>
    %169 = arith.addf %168, %141 : vector<16x32xf32>
    %c0_72 = arith.constant 0 : index
    %c0_73 = arith.constant 0 : index
    %c0_74 = arith.constant 0 : index
    %170 = vector.load %arg14[%c0_72, %c0_73, %c0_74] : memref<2x1x32xf32, #tpu.memory_space<vmem>>, vector<1x1x32xf32>
    %171 = vector.shape_cast %170 : vector<1x1x32xf32> to vector<1x32xf32>
    %c0_75 = arith.constant 0 : index
    %c0_76 = arith.constant 0 : index
    %c0_77 = arith.constant 0 : index
    %172 = vector.load %arg15[%c0_75, %c0_76, %c0_77] : memref<2x1x32xf32, #tpu.memory_space<vmem>>, vector<1x1x32xf32>
    %173 = vector.shape_cast %172 : vector<1x1x32xf32> to vector<1x32xf32>
    %cst_78 = arith.constant dense<0.000000e+00> : vector<16xf32>
    %174 = vector.multi_reduction <add>, %169, %cst_78 [1] : vector<16x32xf32> to vector<16xf32>
    %175 = vector.shape_cast %174 : vector<16xf32> to vector<16x1xf32>
    %cst_79 = arith.constant 3.200000e+01 : f32
    %176 = vector.broadcast %cst_79 : f32 to vector<16x1xf32>
    %177 = arith.divf %175, %176 : vector<16x1xf32>
    %178 = vector.broadcast %177 : vector<16x1xf32> to vector<16x32xf32>
    %179 = arith.subf %169, %178 : vector<16x32xf32>
    %180 = arith.mulf %179, %179 : vector<16x32xf32>
    %cst_80 = arith.constant dense<0.000000e+00> : vector<16xf32>
    %181 = vector.multi_reduction <add>, %180, %cst_80 [1] : vector<16x32xf32> to vector<16xf32>
    %182 = vector.shape_cast %181 : vector<16xf32> to vector<16x1xf32>
    %cst_81 = arith.constant 3.200000e+01 : f32
    %183 = vector.broadcast %cst_81 : f32 to vector<16x1xf32>
    %184 = arith.divf %182, %183 : vector<16x1xf32>
    %cst_82 = arith.constant 9.99999996E-13 : f32
    %185 = vector.broadcast %cst_82 : f32 to vector<16x1xf32>
    %186 = arith.addf %184, %185 : vector<16x1xf32>
    %187 = math.rsqrt %186 : vector<16x1xf32>
    %188 = vector.broadcast %187 : vector<16x1xf32> to vector<16x32xf32>
    %189 = arith.mulf %179, %188 : vector<16x32xf32>
    %190 = vector.broadcast %171 : vector<1x32xf32> to vector<16x32xf32>
    %191 = arith.mulf %189, %190 : vector<16x32xf32>
    %192 = vector.broadcast %173 : vector<1x32xf32> to vector<16x32xf32>
    %193 = arith.addf %191, %192 : vector<16x32xf32>
    %c1 = arith.constant 1 : index
    %c0_83 = arith.constant 0 : index
    %c0_84 = arith.constant 0 : index
    %194 = vector.load %arg4[%c1, %c0_83, %c0_84] : memref<2x32x96xf32, #tpu.memory_space<vmem>>, vector<1x32x96xf32>
    %195 = vector.shape_cast %194 : vector<1x32x96xf32> to vector<32x96xf32>
    %cst_85 = arith.constant dense<0.000000e+00> : vector<16x96xf32>
    %196 = tpu.matmul %193, %195, %cst_85 {dimension_numbers = #tpu.dot_dimension_numbers<[1], [0], [0], [1], [0, 0, 1, 1], [], []>} : vector<16x32xf32>, vector<32x96xf32>, vector<16x96xf32> -> vector<16x96xf32>
    %c1_86 = arith.constant 1 : index
    %c0_87 = arith.constant 0 : index
    %c0_88 = arith.constant 0 : index
    %197 = vector.load %arg5[%c1_86, %c0_87, %c0_88] : memref<2x1x96xf32, #tpu.memory_space<vmem>>, vector<1x1x96xf32>
    %198 = vector.shape_cast %197 : vector<1x1x96xf32> to vector<1x96xf32>
    %199 = vector.broadcast %198 : vector<1x96xf32> to vector<16x96xf32>
    %200 = arith.addf %196, %199 : vector<16x96xf32>
    %201 = vector.extract_strided_slice %200 {offsets = [0, 0], sizes = [16, 32], strides = [1, 1]} : vector<16x96xf32> to vector<16x32xf32>
    %cst_89 = arith.constant 0.353553385 : f32
    %202 = vector.broadcast %cst_89 : f32 to vector<16x32xf32>
    %203 = arith.mulf %201, %202 : vector<16x32xf32>
    %204 = vector.shape_cast %203 : vector<16x32xf32> to vector<2x8x32xf32>
    %205 = vector.extract_strided_slice %200 {offsets = [0, 32], sizes = [16, 32], strides = [1, 1]} : vector<16x96xf32> to vector<16x32xf32>
    %206 = vector.shape_cast %205 : vector<16x32xf32> to vector<2x8x32xf32>
    %207 = vector.extract_strided_slice %200 {offsets = [0, 64], sizes = [16, 32], strides = [1, 1]} : vector<16x96xf32> to vector<16x32xf32>
    %208 = vector.shape_cast %207 : vector<16x32xf32> to vector<2x8x32xf32>
    %209 = vector.extract_strided_slice %204 {offsets = [0, 0, 0], sizes = [2, 8, 8], strides = [1, 1, 1]} : vector<2x8x32xf32> to vector<2x8x8xf32>
    %210 = vector.extract_strided_slice %206 {offsets = [0, 0, 0], sizes = [2, 8, 8], strides = [1, 1, 1]} : vector<2x8x32xf32> to vector<2x8x8xf32>
    "tpu.trace_start"() <{level = 10 : i32, message = "bqd,bkd->bqk"}> : () -> ()
    %cst_90 = arith.constant dense<0.000000e+00> : vector<2x8x8xf32>
    %211 = tpu.matmul %209, %210, %cst_90 {dimension_numbers = #tpu.dot_dimension_numbers<[2], [2], [1], [1], [0, 0, 0, 1, 1, 1], [0], [0]>} : vector<2x8x8xf32>, vector<2x8x8xf32>, vector<2x8x8xf32> -> vector<2x8x8xf32>
    "tpu.trace_stop"() : () -> ()
    %212 = arith.addf %211, %25 : vector<2x8x8xf32>
    %cst_91 = arith.constant dense<0xFF800000> : vector<2x8xf32>
    %213 = vector.multi_reduction <maximumf>, %212, %cst_91 [2] : vector<2x8x8xf32> to vector<2x8xf32>
    %214 = vector.shape_cast %213 : vector<2x8xf32> to vector<2x8x1xf32>
    %215 = vector.broadcast %214 : vector<2x8x1xf32> to vector<2x8x8xf32>
    %216 = arith.subf %212, %215 : vector<2x8x8xf32>
    %217 = math.exp %216 : vector<2x8x8xf32>
    %cst_92 = arith.constant dense<0.000000e+00> : vector<2x8xf32>
    %218 = vector.multi_reduction <add>, %217, %cst_92 [2] : vector<2x8x8xf32> to vector<2x8xf32>
    %219 = vector.shape_cast %218 : vector<2x8xf32> to vector<2x8x1xf32>
    %220 = tpu.reciprocal %219 {approx = true} : vector<2x8x1xf32> -> vector<2x8x1xf32>
    %221 = vector.broadcast %220 : vector<2x8x1xf32> to vector<2x8x8xf32>
    %222 = arith.mulf %217, %221 : vector<2x8x8xf32>
    %223 = vector.extract_strided_slice %208 {offsets = [0, 0, 0], sizes = [2, 8, 8], strides = [1, 1, 1]} : vector<2x8x32xf32> to vector<2x8x8xf32>
    "tpu.trace_start"() <{level = 10 : i32, message = "bqk,bkd->bqd"}> : () -> ()
    %cst_93 = arith.constant dense<0.000000e+00> : vector<2x8x8xf32>
    %224 = tpu.matmul %222, %223, %cst_93 {dimension_numbers = #tpu.dot_dimension_numbers<[2], [1], [1], [2], [0, 0, 0, 1, 1, 2], [0], [0]>} : vector<2x8x8xf32>, vector<2x8x8xf32>, vector<2x8x8xf32> -> vector<2x8x8xf32>
    "tpu.trace_stop"() : () -> ()
    %225 = vector.shape_cast %224 : vector<2x8x8xf32> to vector<16x8xf32>
    %226 = vector.extract_strided_slice %204 {offsets = [0, 0, 8], sizes = [2, 8, 8], strides = [1, 1, 1]} : vector<2x8x32xf32> to vector<2x8x8xf32>
    %227 = vector.extract_strided_slice %206 {offsets = [0, 0, 8], sizes = [2, 8, 8], strides = [1, 1, 1]} : vector<2x8x32xf32> to vector<2x8x8xf32>
    "tpu.trace_start"() <{level = 10 : i32, message = "bqd,bkd->bqk"}> : () -> ()
    %cst_94 = arith.constant dense<0.000000e+00> : vector<2x8x8xf32>
    %228 = tpu.matmul %226, %227, %cst_94 {dimension_numbers = #tpu.dot_dimension_numbers<[2], [2], [1], [1], [0, 0, 0, 1, 1, 1], [0], [0]>} : vector<2x8x8xf32>, vector<2x8x8xf32>, vector<2x8x8xf32> -> vector<2x8x8xf32>
    "tpu.trace_stop"() : () -> ()
    %229 = arith.addf %228, %25 : vector<2x8x8xf32>
    %cst_95 = arith.constant dense<0xFF800000> : vector<2x8xf32>
    %230 = vector.multi_reduction <maximumf>, %229, %cst_95 [2] : vector<2x8x8xf32> to vector<2x8xf32>
    %231 = vector.shape_cast %230 : vector<2x8xf32> to vector<2x8x1xf32>
    %232 = vector.broadcast %231 : vector<2x8x1xf32> to vector<2x8x8xf32>
    %233 = arith.subf %229, %232 : vector<2x8x8xf32>
    %234 = math.exp %233 : vector<2x8x8xf32>
    %cst_96 = arith.constant dense<0.000000e+00> : vector<2x8xf32>
    %235 = vector.multi_reduction <add>, %234, %cst_96 [2] : vector<2x8x8xf32> to vector<2x8xf32>
    %236 = vector.shape_cast %235 : vector<2x8xf32> to vector<2x8x1xf32>
    %237 = tpu.reciprocal %236 {approx = true} : vector<2x8x1xf32> -> vector<2x8x1xf32>
    %238 = vector.broadcast %237 : vector<2x8x1xf32> to vector<2x8x8xf32>
    %239 = arith.mulf %234, %238 : vector<2x8x8xf32>
    %240 = vector.extract_strided_slice %208 {offsets = [0, 0, 8], sizes = [2, 8, 8], strides = [1, 1, 1]} : vector<2x8x32xf32> to vector<2x8x8xf32>
    "tpu.trace_start"() <{level = 10 : i32, message = "bqk,bkd->bqd"}> : () -> ()
    %cst_97 = arith.constant dense<0.000000e+00> : vector<2x8x8xf32>
    %241 = tpu.matmul %239, %240, %cst_97 {dimension_numbers = #tpu.dot_dimension_numbers<[2], [1], [1], [2], [0, 0, 0, 1, 1, 2], [0], [0]>} : vector<2x8x8xf32>, vector<2x8x8xf32>, vector<2x8x8xf32> -> vector<2x8x8xf32>
    "tpu.trace_stop"() : () -> ()
    %242 = vector.shape_cast %241 : vector<2x8x8xf32> to vector<16x8xf32>
    %243 = vector.extract_strided_slice %204 {offsets = [0, 0, 16], sizes = [2, 8, 8], strides = [1, 1, 1]} : vector<2x8x32xf32> to vector<2x8x8xf32>
    %244 = vector.extract_strided_slice %206 {offsets = [0, 0, 16], sizes = [2, 8, 8], strides = [1, 1, 1]} : vector<2x8x32xf32> to vector<2x8x8xf32>
    "tpu.trace_start"() <{level = 10 : i32, message = "bqd,bkd->bqk"}> : () -> ()
    %cst_98 = arith.constant dense<0.000000e+00> : vector<2x8x8xf32>
    %245 = tpu.matmul %243, %244, %cst_98 {dimension_numbers = #tpu.dot_dimension_numbers<[2], [2], [1], [1], [0, 0, 0, 1, 1, 1], [0], [0]>} : vector<2x8x8xf32>, vector<2x8x8xf32>, vector<2x8x8xf32> -> vector<2x8x8xf32>
    "tpu.trace_stop"() : () -> ()
    %246 = arith.addf %245, %25 : vector<2x8x8xf32>
    %cst_99 = arith.constant dense<0xFF800000> : vector<2x8xf32>
    %247 = vector.multi_reduction <maximumf>, %246, %cst_99 [2] : vector<2x8x8xf32> to vector<2x8xf32>
    %248 = vector.shape_cast %247 : vector<2x8xf32> to vector<2x8x1xf32>
    %249 = vector.broadcast %248 : vector<2x8x1xf32> to vector<2x8x8xf32>
    %250 = arith.subf %246, %249 : vector<2x8x8xf32>
    %251 = math.exp %250 : vector<2x8x8xf32>
    %cst_100 = arith.constant dense<0.000000e+00> : vector<2x8xf32>
    %252 = vector.multi_reduction <add>, %251, %cst_100 [2] : vector<2x8x8xf32> to vector<2x8xf32>
    %253 = vector.shape_cast %252 : vector<2x8xf32> to vector<2x8x1xf32>
    %254 = tpu.reciprocal %253 {approx = true} : vector<2x8x1xf32> -> vector<2x8x1xf32>
    %255 = vector.broadcast %254 : vector<2x8x1xf32> to vector<2x8x8xf32>
    %256 = arith.mulf %251, %255 : vector<2x8x8xf32>
    %257 = vector.extract_strided_slice %208 {offsets = [0, 0, 16], sizes = [2, 8, 8], strides = [1, 1, 1]} : vector<2x8x32xf32> to vector<2x8x8xf32>
    "tpu.trace_start"() <{level = 10 : i32, message = "bqk,bkd->bqd"}> : () -> ()
    %cst_101 = arith.constant dense<0.000000e+00> : vector<2x8x8xf32>
    %258 = tpu.matmul %256, %257, %cst_101 {dimension_numbers = #tpu.dot_dimension_numbers<[2], [1], [1], [2], [0, 0, 0, 1, 1, 2], [0], [0]>} : vector<2x8x8xf32>, vector<2x8x8xf32>, vector<2x8x8xf32> -> vector<2x8x8xf32>
    "tpu.trace_stop"() : () -> ()
    %259 = vector.shape_cast %258 : vector<2x8x8xf32> to vector<16x8xf32>
    %260 = vector.extract_strided_slice %204 {offsets = [0, 0, 24], sizes = [2, 8, 8], strides = [1, 1, 1]} : vector<2x8x32xf32> to vector<2x8x8xf32>
    %261 = vector.extract_strided_slice %206 {offsets = [0, 0, 24], sizes = [2, 8, 8], strides = [1, 1, 1]} : vector<2x8x32xf32> to vector<2x8x8xf32>
    "tpu.trace_start"() <{level = 10 : i32, message = "bqd,bkd->bqk"}> : () -> ()
    %cst_102 = arith.constant dense<0.000000e+00> : vector<2x8x8xf32>
    %262 = tpu.matmul %260, %261, %cst_102 {dimension_numbers = #tpu.dot_dimension_numbers<[2], [2], [1], [1], [0, 0, 0, 1, 1, 1], [0], [0]>} : vector<2x8x8xf32>, vector<2x8x8xf32>, vector<2x8x8xf32> -> vector<2x8x8xf32>
    "tpu.trace_stop"() : () -> ()
    %263 = arith.addf %262, %25 : vector<2x8x8xf32>
    %cst_103 = arith.constant dense<0xFF800000> : vector<2x8xf32>
    %264 = vector.multi_reduction <maximumf>, %263, %cst_103 [2] : vector<2x8x8xf32> to vector<2x8xf32>
    %265 = vector.shape_cast %264 : vector<2x8xf32> to vector<2x8x1xf32>
    %266 = vector.broadcast %265 : vector<2x8x1xf32> to vector<2x8x8xf32>
    %267 = arith.subf %263, %266 : vector<2x8x8xf32>
    %268 = math.exp %267 : vector<2x8x8xf32>
    %cst_104 = arith.constant dense<0.000000e+00> : vector<2x8xf32>
    %269 = vector.multi_reduction <add>, %268, %cst_104 [2] : vector<2x8x8xf32> to vector<2x8xf32>
    %270 = vector.shape_cast %269 : vector<2x8xf32> to vector<2x8x1xf32>
    %271 = tpu.reciprocal %270 {approx = true} : vector<2x8x1xf32> -> vector<2x8x1xf32>
    %272 = vector.broadcast %271 : vector<2x8x1xf32> to vector<2x8x8xf32>
    %273 = arith.mulf %268, %272 : vector<2x8x8xf32>
    %274 = vector.extract_strided_slice %208 {offsets = [0, 0, 24], sizes = [2, 8, 8], strides = [1, 1, 1]} : vector<2x8x32xf32> to vector<2x8x8xf32>
    "tpu.trace_start"() <{level = 10 : i32, message = "bqk,bkd->bqd"}> : () -> ()
    %cst_105 = arith.constant dense<0.000000e+00> : vector<2x8x8xf32>
    %275 = tpu.matmul %273, %274, %cst_105 {dimension_numbers = #tpu.dot_dimension_numbers<[2], [1], [1], [2], [0, 0, 0, 1, 1, 2], [0], [0]>} : vector<2x8x8xf32>, vector<2x8x8xf32>, vector<2x8x8xf32> -> vector<2x8x8xf32>
    "tpu.trace_stop"() : () -> ()
    %276 = vector.shape_cast %275 : vector<2x8x8xf32> to vector<16x8xf32>
    %277 = tpu.concatenate %225, %242, %259, %276 in 1 : vector<16x8xf32>, vector<16x8xf32>, vector<16x8xf32>, vector<16x8xf32> -> vector<16x32xf32>
    %c1_106 = arith.constant 1 : index
    %c0_107 = arith.constant 0 : index
    %c0_108 = arith.constant 0 : index
    %278 = vector.load %arg6[%c1_106, %c0_107, %c0_108] : memref<2x32x32xf32, #tpu.memory_space<vmem>>, vector<1x32x32xf32>
    %279 = vector.shape_cast %278 : vector<1x32x32xf32> to vector<32x32xf32>
    %cst_109 = arith.constant dense<0.000000e+00> : vector<16x32xf32>
    %280 = tpu.matmul %277, %279, %cst_109 {dimension_numbers = #tpu.dot_dimension_numbers<[1], [0], [0], [1], [0, 0, 1, 1], [], []>} : vector<16x32xf32>, vector<32x32xf32>, vector<16x32xf32> -> vector<16x32xf32>
    %c1_110 = arith.constant 1 : index
    %c0_111 = arith.constant 0 : index
    %c0_112 = arith.constant 0 : index
    %281 = vector.load %arg7[%c1_110, %c0_111, %c0_112] : memref<2x1x32xf32, #tpu.memory_space<vmem>>, vector<1x1x32xf32>
    %282 = vector.shape_cast %281 : vector<1x1x32xf32> to vector<1x32xf32>
    %283 = vector.broadcast %282 : vector<1x32xf32> to vector<16x32xf32>
    %284 = arith.addf %280, %283 : vector<16x32xf32>
    %285 = arith.addf %284, %193 : vector<16x32xf32>
    %c1_113 = arith.constant 1 : index
    %c0_114 = arith.constant 0 : index
    %c0_115 = arith.constant 0 : index
    %286 = vector.load %arg8[%c1_113, %c0_114, %c0_115] : memref<2x1x32xf32, #tpu.memory_space<vmem>>, vector<1x1x32xf32>
    %287 = vector.shape_cast %286 : vector<1x1x32xf32> to vector<1x32xf32>
    %c1_116 = arith.constant 1 : index
    %c0_117 = arith.constant 0 : index
    %c0_118 = arith.constant 0 : index
    %288 = vector.load %arg9[%c1_116, %c0_117, %c0_118] : memref<2x1x32xf32, #tpu.memory_space<vmem>>, vector<1x1x32xf32>
    %289 = vector.shape_cast %288 : vector<1x1x32xf32> to vector<1x32xf32>
    %cst_119 = arith.constant dense<0.000000e+00> : vector<16xf32>
    %290 = vector.multi_reduction <add>, %285, %cst_119 [1] : vector<16x32xf32> to vector<16xf32>
    %291 = vector.shape_cast %290 : vector<16xf32> to vector<16x1xf32>
    %cst_120 = arith.constant 3.200000e+01 : f32
    %292 = vector.broadcast %cst_120 : f32 to vector<16x1xf32>
    %293 = arith.divf %291, %292 : vector<16x1xf32>
    %294 = vector.broadcast %293 : vector<16x1xf32> to vector<16x32xf32>
    %295 = arith.subf %285, %294 : vector<16x32xf32>
    %296 = arith.mulf %295, %295 : vector<16x32xf32>
    %cst_121 = arith.constant dense<0.000000e+00> : vector<16xf32>
    %297 = vector.multi_reduction <add>, %296, %cst_121 [1] : vector<16x32xf32> to vector<16xf32>
    %298 = vector.shape_cast %297 : vector<16xf32> to vector<16x1xf32>
    %cst_122 = arith.constant 3.200000e+01 : f32
    %299 = vector.broadcast %cst_122 : f32 to vector<16x1xf32>
    %300 = arith.divf %298, %299 : vector<16x1xf32>
    %cst_123 = arith.constant 9.99999996E-13 : f32
    %301 = vector.broadcast %cst_123 : f32 to vector<16x1xf32>
    %302 = arith.addf %300, %301 : vector<16x1xf32>
    %303 = math.rsqrt %302 : vector<16x1xf32>
    %304 = vector.broadcast %303 : vector<16x1xf32> to vector<16x32xf32>
    %305 = arith.mulf %295, %304 : vector<16x32xf32>
    %306 = vector.broadcast %287 : vector<1x32xf32> to vector<16x32xf32>
    %307 = arith.mulf %305, %306 : vector<16x32xf32>
    %308 = vector.broadcast %289 : vector<1x32xf32> to vector<16x32xf32>
    %309 = arith.addf %307, %308 : vector<16x32xf32>
    %c1_124 = arith.constant 1 : index
    %c0_125 = arith.constant 0 : index
    %c0_126 = arith.constant 0 : index
    %310 = vector.load %arg10[%c1_124, %c0_125, %c0_126] : memref<2x32x64xf32, #tpu.memory_space<vmem>>, vector<1x32x64xf32>
    %311 = vector.shape_cast %310 : vector<1x32x64xf32> to vector<32x64xf32>
    %cst_127 = arith.constant dense<0.000000e+00> : vector<16x64xf32>
    %312 = tpu.matmul %309, %311, %cst_127 {dimension_numbers = #tpu.dot_dimension_numbers<[1], [0], [0], [1], [0, 0, 1, 1], [], []>} : vector<16x32xf32>, vector<32x64xf32>, vector<16x64xf32> -> vector<16x64xf32>
    %c1_128 = arith.constant 1 : index
    %c0_129 = arith.constant 0 : index
    %c0_130 = arith.constant 0 : index
    %313 = vector.load %arg11[%c1_128, %c0_129, %c0_130] : memref<2x1x64xf32, #tpu.memory_space<vmem>>, vector<1x1x64xf32>
    %314 = vector.shape_cast %313 : vector<1x1x64xf32> to vector<1x64xf32>
    %315 = vector.broadcast %314 : vector<1x64xf32> to vector<16x64xf32>
    %316 = arith.addf %312, %315 : vector<16x64xf32>
    %cst_131 = arith.constant 5.000000e-01 : f32
    %317 = vector.broadcast %cst_131 : f32 to vector<16x64xf32>
    %318 = arith.mulf %317, %316 : vector<16x64xf32>
    %cst_132 = arith.constant 4.471500e-02 : f32
    %319 = vector.broadcast %cst_132 : f32 to vector<16x64xf32>
    %320 = arith.mulf %319, %316 : vector<16x64xf32>
    %321 = arith.mulf %320, %316 : vector<16x64xf32>
    %322 = arith.mulf %321, %316 : vector<16x64xf32>
    %323 = arith.addf %316, %322 : vector<16x64xf32>
    %cst_133 = arith.constant 0.797884583 : f32
    %324 = vector.broadcast %cst_133 : f32 to vector<16x64xf32>
    %325 = arith.mulf %324, %323 : vector<16x64xf32>
    %326 = math.tanh %325 : vector<16x64xf32>
    %cst_134 = arith.constant 1.000000e+00 : f32
    %327 = vector.broadcast %cst_134 : f32 to vector<16x64xf32>
    %328 = arith.addf %327, %326 : vector<16x64xf32>
    %329 = arith.mulf %318, %328 : vector<16x64xf32>
    %c1_135 = arith.constant 1 : index
    %c0_136 = arith.constant 0 : index
    %c0_137 = arith.constant 0 : index
    %330 = vector.load %arg12[%c1_135, %c0_136, %c0_137] : memref<2x64x32xf32, #tpu.memory_space<vmem>>, vector<1x64x32xf32>
    %331 = vector.shape_cast %330 : vector<1x64x32xf32> to vector<64x32xf32>
    %cst_138 = arith.constant dense<0.000000e+00> : vector<16x32xf32>
    %332 = tpu.matmul %329, %331, %cst_138 {dimension_numbers = #tpu.dot_dimension_numbers<[1], [0], [0], [1], [0, 0, 1, 1], [], []>} : vector<16x64xf32>, vector<64x32xf32>, vector<16x32xf32> -> vector<16x32xf32>
    %c1_139 = arith.constant 1 : index
    %c0_140 = arith.constant 0 : index
    %c0_141 = arith.constant 0 : index
    %333 = vector.load %arg13[%c1_139, %c0_140, %c0_141] : memref<2x1x32xf32, #tpu.memory_space<vmem>>, vector<1x1x32xf32>
    %334 = vector.shape_cast %333 : vector<1x1x32xf32> to vector<1x32xf32>
    %335 = vector.broadcast %334 : vector<1x32xf32> to vector<16x32xf32>
    %336 = arith.addf %332, %335 : vector<16x32xf32>
    %337 = arith.addf %336, %309 : vector<16x32xf32>
    %c1_142 = arith.constant 1 : index
    %c0_143 = arith.constant 0 : index
    %c0_144 = arith.constant 0 : index
    %338 = vector.load %arg14[%c1_142, %c0_143, %c0_144] : memref<2x1x32xf32, #tpu.memory_space<vmem>>, vector<1x1x32xf32>
    %339 = vector.shape_cast %338 : vector<1x1x32xf32> to vector<1x32xf32>
    %c1_145 = arith.constant 1 : index
    %c0_146 = arith.constant 0 : index
    %c0_147 = arith.constant 0 : index
    %340 = vector.load %arg15[%c1_145, %c0_146, %c0_147] : memref<2x1x32xf32, #tpu.memory_space<vmem>>, vector<1x1x32xf32>
    %341 = vector.shape_cast %340 : vector<1x1x32xf32> to vector<1x32xf32>
    %cst_148 = arith.constant dense<0.000000e+00> : vector<16xf32>
    %342 = vector.multi_reduction <add>, %337, %cst_148 [1] : vector<16x32xf32> to vector<16xf32>
    %343 = vector.shape_cast %342 : vector<16xf32> to vector<16x1xf32>
    %cst_149 = arith.constant 3.200000e+01 : f32
    %344 = vector.broadcast %cst_149 : f32 to vector<16x1xf32>
    %345 = arith.divf %343, %344 : vector<16x1xf32>
    %346 = vector.broadcast %345 : vector<16x1xf32> to vector<16x32xf32>
    %347 = arith.subf %337, %346 : vector<16x32xf32>
    %348 = arith.mulf %347, %347 : vector<16x32xf32>
    %cst_150 = arith.constant dense<0.000000e+00> : vector<16xf32>
    %349 = vector.multi_reduction <add>, %348, %cst_150 [1] : vector<16x32xf32> to vector<16xf32>
    %350 = vector.shape_cast %349 : vector<16xf32> to vector<16x1xf32>
    %cst_151 = arith.constant 3.200000e+01 : f32
    %351 = vector.broadcast %cst_151 : f32 to vector<16x1xf32>
    %352 = arith.divf %350, %351 : vector<16x1xf32>
    %cst_152 = arith.constant 9.99999996E-13 : f32
    %353 = vector.broadcast %cst_152 : f32 to vector<16x1xf32>
    %354 = arith.addf %352, %353 : vector<16x1xf32>
    %355 = math.rsqrt %354 : vector<16x1xf32>
    %356 = vector.broadcast %355 : vector<16x1xf32> to vector<16x32xf32>
    %357 = arith.mulf %347, %356 : vector<16x32xf32>
    %358 = vector.broadcast %339 : vector<1x32xf32> to vector<16x32xf32>
    %359 = arith.mulf %357, %358 : vector<16x32xf32>
    %360 = vector.broadcast %341 : vector<1x32xf32> to vector<16x32xf32>
    %361 = arith.addf %359, %360 : vector<16x32xf32>
    %c0_153 = arith.constant 0 : index
    %c0_154 = arith.constant 0 : index
    %362 = vector.load %arg19[%c0_153, %c0_154] : memref<16x32xf32, #tpu.memory_space<vmem>>, vector<16x32xf32>
    tpu.vector_store %arg19[%c0_153, %c0_154], %361 {strides = array<i32>} : memref<16x32xf32, #tpu.memory_space<vmem>>, vector<16x32xf32>,
    %363 = vector.shape_cast %361 : vector<16x32xf32> to vector<2x8x32xf32>
    %364 = vector.extract_strided_slice %363 {offsets = [0, 0, 0], sizes = [2, 1, 32], strides = [1, 1, 1]} : vector<2x8x32xf32> to vector<2x1x32xf32>
    %365 = vector.shape_cast %364 : vector<2x1x32xf32> to vector<2x32xf32>
    %c0_155 = arith.constant 0 : index
    %c0_156 = arith.constant 0 : index
    %366 = vector.load %arg16[%c0_155, %c0_156] : memref<32x32xf32, #tpu.memory_space<vmem>>, vector<32x32xf32>
    %cst_157 = arith.constant dense<0.000000e+00> : vector<2x32xf32>
    %367 = tpu.matmul %365, %366, %cst_157 {dimension_numbers = #tpu.dot_dimension_numbers<[1], [0], [0], [1], [0, 0, 1, 1], [], []>} : vector<2x32xf32>, vector<32x32xf32>, vector<2x32xf32> -> vector<2x32xf32>
    %c0_158 = arith.constant 0 : index
    %c0_159 = arith.constant 0 : index
    %368 = vector.load %arg17[%c0_158, %c0_159] : memref<1x32xf32, #tpu.memory_space<vmem>>, vector<1x32xf32>
    %369 = vector.broadcast %368 : vector<1x32xf32> to vector<2x32xf32>
    %370 = arith.addf %367, %369 : vector<2x32xf32>
    %371 = math.tanh %370 : vector<2x32xf32>
    %c0_160 = arith.constant 0 : index
    %c0_161 = arith.constant 0 : index
    %372 = vector.load %arg18[%c0_160, %c0_161] : memref<2x32xf32, #tpu.memory_space<vmem>>, vector<2x32xf32>
    tpu.vector_store %arg18[%c0_160, %c0_161], %371 {strides = array<i32>} : memref<2x32xf32, #tpu.memory_space<vmem>>, vector<2x32xf32>,
    return
  }
}

</mosaic_0001>

<bundles_post_ra>
// kernel: momu_text_encoder_forward.1
= control target key start
LH: loop header
LB: loop body
LE: loop exit
PB: predicated region body
PF: predicated region fallthrough
CT: control target
= control target key end

     0   :  { %s5465_s0 = inlined_call_operand.vmem [shape: f32[16,32], index: 0, kind: input, shape index: {}]   ;;  %s5466_s1 = inlined_call_operand.vmem [shape: f32[2,1,8], index: 1, kind: input, shape index: {}]   ;;  %s5467_s2 = inlined_call_operand.vmem [shape: f32[1,32], index: 2, kind: input, shape index: {}]   ;;  %s5468_s3 = inlined_call_operand.vmem [shape: f32[1,32], index: 3, kind: input, shape index: {}]   ;;  %s5469_s4 = inlined_call_operand.vmem [shape: f32[2,32,96], index: 4, kind: input, shape index: {}]   ;;  %s5470_s5 = inlined_call_operand.vmem [shape: f32[2,1,96], index: 5, kind: input, shape index: {}]   ;;  %s5471_s6 = inlined_call_operand.vmem [shape: f32[2,32,32], index: 6, kind: input, shape index: {}]   ;;  %s5472_s7 = inlined_call_operand.vmem [shape: f32[2,1,32], index: 7, kind: input, shape index: {}]   ;;  %s5473_s8 = inlined_call_operand.vmem [shape: f32[2,1,32], index: 8, kind: input, shape index: {}]   ;;  %s5474_s9 = inlined_call_operand.vmem [shape: f32[2,1,32], index: 9, kind: input, shape index: {}]   ;;  %s5475_s10 = inlined_call_operand.vmem [shape: f32[2,32,64], index: 10, kind: input, shape index: {}]   ;;  %s5476_s11 = inlined_call_operand.vmem [shape: f32[2,1,64], index: 11, kind: input, shape index: {}]   ;;  %s5477_s12 = inlined_call_operand.vmem [shape: f32[2,64,32], index: 12, kind: input, shape index: {}]   ;;  %s5478_s13 = inlined_call_operand.vmem [shape: f32[2,1,32], index: 13, kind: input, shape index: {}]   ;;  %s5479_s14 = inlined_call_operand.vmem [shape: f32[2,1,32], index: 14, kind: input, shape index: {}]   ;;  %s5480_s15 = inlined_call_operand.vmem [shape: f32[2,1,32], index: 15, kind: input, shape index: {}]   ;;  %s5481_s16 = inlined_call_operand.vmem [shape: f32[32,32], index: 16, kind: input, shape index: {}]   ;;  %s5482_s17 = inlined_call_operand.vmem [shape: f32[1,32], index: 17, kind: input, shape index: {}]   ;;  %s5483_s18 = inlined_call_operand.hbm [shape: f32[2,32], index: 18, kind: output, shape index: {0}]   ;;  %s5484_s19 = inlined_call_operand.hbm [shape: f32[16,32], index: 19, kind: output, shape index: {1}]  }
   0x1   :  { %5507 = sst [smem:[#allocation8_spill]] %s5465_s0 }
   0x2   :  { %5508 = sst [smem:[#allocation9_spill]] %s5466_s1 }
   0x3   :  { %5509 = sst [smem:[#allocation10_spill]] %s5467_s2 }
   0x4   :  { %5510 = sst [smem:[#allocation11_spill]] %s5468_s3 }
   0x5   :  { %25 = vsyncpa [#allocation3], 0  ;;  %s5511_s20 = sld [smem:[#allocation8_spill]]  ;;  %vm67_vm0 = vcmask 261120  }
   0xb   :  { %v63_v0 = vld [vmem:[%s5511_s20] sm:$0xff]  ;;  %v64_v1 = vld [vmem:[%s5511_s20 + $0x8] sm:$0xff] }
   0xc   :  { %26 = vsyncpa [#allocation5], 0  ;;  %v68_v2 = vsel %vm67_vm0, %v63_v0, 0.0  ;;  %v71_v3 = vsel %vm67_vm0, %v64_v1, 0.0  ;;  %v125_v14 = vld [vmem:[%s5469_s4] sm:$0xff]  ;;  %v126_v15 = vld [vmem:[%s5469_s4 + $0x8] sm:$0xff] }
   0xd   :  { %69 = vadd.xlane.f32.xlu0 %v68_v2  ;;  %v127_v16 = vld [vmem:[%s5469_s4 + $0x10] sm:$0xff]  ;;  %v4446_v17 = vpack.c.bf16 %v126_v15, %v125_v14  ;;  %v128_v18 = vld [vmem:[%s5469_s4 + $0x18] sm:$0xff]  ;;  %s5512_s0 = sld [smem:[#allocation10_spill]]  ;;  %s5513_s21 = sld [smem:[#allocation11_spill]]  ;;  %v4696_v36 = vmov 0.0   ;;  %vm4697_vm1 = vmmov 0  }
   0xe   :  { %v4450_v19 = vpack.c.bf16 %v128_v18, %v127_v16  ;;  %4182 = vmatprep.subr.mxu1 %v4696_v36  ;;  %4184 = vmatprep.mubr.msk.f32.mxu1 %vm4697_vm1, %v4696_v36  ;;  %v3936_v37 = vld [vmem:[%s5470_s5] ss:$0 sm:$0xff]  ;;  %s4698_s2 = smov 96   ;;  %vm222_vm2 = vcmask 64512   ;;  %s5514_s25 = sld [smem:[#allocation9_spill]]  ;;  %vm1569_vm3 = vcmask 195584  }
   0xf   :  { %4447 = vmatprep.subr.bf16.mxu0 %v4446_v17  ;;  %s4699_s27 = smov 64   ;;  %s4700_s28 = smov 88   ;;  %vm1566_vm4 = vcmask 130048   ;;  %vm1835_vm5 = vcmask 523264   ;;  %vm3825_vm6 = vcmask 1041409  }
  0x10   :  { %4449 = vmatpush3.bf16.msra.mxu0 %v4446_v17  ;;  %s4701_s29 = smov 120   ;;  %s5503_s30 = smov 80  }
  0x11   :  { %72 = vadd.xlane.f32.xlu0 %v71_v3  ;;  %4451 = vmatprep.subr.bf16.mxu0 %v4450_v19  ;;  %s5499_s20 = smov 112   ;;  %s5495_s1 = smov 72  }
  0x12   :  { %s5493_s22 = smov 104   ;;  %s5489_s23 = smov 40  }
  0x13   :  { %v3932_v27 = vld [vmem:[%s5512_s0] ss:$0 sm:$0xff]  ;;  %s5505_s0 = smov 56   ;;  %s5487_s24 = smov 8  }
  0x14   :  { %4453 = vmatpush3.bf16.msra.mxu0 %v4450_v19  ;;  %v3933_v29 = vld [vmem:[%s5513_s21] ss:$0 sm:$0xff]  ;;  %v4896_v50 = vld [vmem:[%s5514_s25 + $0x1] ss:$0 sm:$0xff]  ;;  %s5497_s21 = smov 48   ;;  %s5491_s3 = smov 16  }
  0x15   :  { %4202 = vmatprep.subr.mxu0 %v4696_v36  ;;  %v4890_v46 = vld [vmem:[%s5514_s25] ss:$0 sm:$0xff] }
  0x9a   :  { %v70_v4 = vpop.xlane.xlu0 %69 }
  0x9b   :  { %v75_v5 = vmul.f32 0.03125, %v70_v4 }
  0x9d   :  { %v77_v6 = vsub.f32 %v63_v0, %v75_v5 }
  0x9e   :  { %v73_v7 = vpop.xlane.xlu0 %72 }
  0x9f   :  { %v76_v8 = vmul.f32 0.03125, %v73_v7  ;;  %v79_v9 = vmul.f32 %v77_v6, %v77_v6 }
  0xa1   :  { %v78_v10 = vsub.f32 %v64_v1, %v76_v8  ;;  %v81_v11 = vsel %vm67_vm0, %v79_v9, 0.0 }
  0xa2   :  { %82 = vadd.xlane.f32.xlu1 %v81_v11 }
  0xa3   :  { %v80_v12 = vmul.f32 %v78_v10, %v78_v10 }
  0xa5   :  { %v84_v13 = vsel %vm67_vm0, %v80_v12, 0.0 }
  0xa6   :  { %85 = vadd.xlane.f32.xlu1 %v84_v13 }
 0x12f   :  { %v83_v20 = vpop.xlane.xlu1 %82 }
 0x130   :  { %v87_v21 = vmul.f32 0.03125, %v83_v20 }
 0x132   :  { %v89_v22 = vadd.f32 1e-12, %v87_v21 }
 0x133   :  { %v86_v23 = vpop.xlane.xlu1 %85 }
 0x134   :  { %4552 = vrsqrt.f32 %v89_v22  ;;  %v88_v24 = vmul.f32 0.03125, %v86_v23 }
 0x136   :  { %v90_v25 = vadd.f32 1e-12, %v88_v24 }
 0x138   :  { %4554 = vrsqrt.f32 %v90_v25 }
 0x13e   :  { %v4553_v26 = vpop.eup %4552 }
 0x13f   :  { %v93_v28 = vmul.f32 %v4553_v26, %v77_v6 }
 0x141   :  { %v101_v30 = vmul.f32 %v3932_v27, %v93_v28 }
 0x142   :  { %v4555_v31 = vpop.eup %4554 }
 0x143   :  { %v94_v32 = vmul.f32 %v4555_v31, %v78_v10  ;;  %v4844_v33 = vadd.f32 %v3933_v29, %v101_v30 }
 0x145   :  { %v102_v34 = vmul.f32 %v3932_v27, %v94_v32  ;;  %4179 = vmatprep.mubr.msk.f32.mxu0 %vm67_vm0, %v4844_v33 }
 0x147   :  { %v4848_v35 = vadd.f32 %v3933_v29, %v102_v34 }
 0x149   :  { %4180 = vmatmul.mubr.msk.f32.vlgmr.msra.gmra.mrb[0].mxu0 %vm67_vm0, %v4848_v35 }
 0x14a   :  { %4204 = vmatprep.mubr.msk.f32.mxu0 %vm4697_vm1, %v4696_v36 }
 0x21c   :  { %v4181_v38 = vpop.f32.mrb[0].mxu0 }
 0x21d   :  { %v4861_v39 = vadd.f32 %v4181_v38, %v3936_v37  ;;  %v208_v40 = vpop.f32.mrb[1].mxu0 }
 0x21e   :  { %v4863_v41 = vadd.f32 %v3936_v37, %v208_v40 }
 0x21f   :  { %299 = vrot.lane.b32.xlu1 %v4861_v39, %s4698_s2  ;;  %v4880_v45 = vmul.f32 0.35355338, %v4861_v39 }
 0x220   :  { %220 = vrot.lane.b32.xlu0 %v4863_v41, %s4698_s2  ;;  %v4871_v43 = vmul.f32 0.35355338, %v4863_v41 }
 0x291   :  { %v300_v44 = vpop.permute.xlu1 %299 }
 0x292   :  { %v221_v42 = vpop.permute.xlu0 %220 }
 0x293   :  { %4183 = vmatpush3.xpose.msk.msra.mxu1 %vm222_vm2, %v221_v42 }
 0x294   :  { %4187 = vmatprep.subr.mxu1 %v4696_v36 }
 0x296   :  { %4185 = vmatmul.mubr.msk.f32.vlgmr.msra.gmra.mrb[0].mxu1 %vm222_vm2, %v4871_v43 }
 0x297   :  { %4188 = vmatpush3.xpose.msk.msra.mxu1 %vm222_vm2, %v300_v44  ;;  %4189 = vmatprep.mubr.msk.f32.mxu1 %vm4697_vm1, %v4696_v36 }
 0x298   :  { %4192 = vmatprep.subr.mxu1 %v4696_v36 }
 0x29a   :  { %4190 = vmatmul.mubr.msk.f32.vlgmr.msra.gmra.mrb[2].mxu1 %vm222_vm2, %v4880_v45 }
 0x29b   :  { %4194 = vmatprep.mubr.msk.f32.mxu1 %vm4697_vm1, %v4696_v36 }
 0x369   :  { %v294_v47 = vpop.f32.mrb[0].mxu1 }
 0x36a   :  { %v295_v48 = vadd.f32 %v4890_v46, %v294_v47  ;;  %v4186_v49 = vpop.f32.mrb[1].mxu1 }
 0x36c   :  { %v376_v51 = vsel %vm222_vm2, %v295_v48, -inf }
 0x36d   :  { %377 = vmax.xlane.f32.xlu1 %v376_v51  ;;  %v372_v52 = vpop.f32.mrb[2].mxu1 }
 0x36e   :  { %v373_v53 = vadd.f32 %v4896_v50, %v372_v52  ;;  %v4191_v54 = vpop.f32.mrb[3].mxu1 }
 0x370   :  { %v379_v55 = vsel %vm222_vm2, %v373_v53, -inf }
 0x371   :  { %380 = vmax.xlane.f32.xlu0 %v379_v55 }
 0x37e   :  { %474 = vrot.lane.b32.xlu1 %v4861_v39, %s4699_s27 }
 0x382   :  { %552 = vrot.lane.b32.xlu1 %v4863_v41, %s4700_s28 }
 0x386   :  { %630 = vrot.lane.b32.xlu1 %v4861_v39, %s4700_s28 }
 0x3fa   :  { %v378_v56 = vpop.xlane.xlu1 %377 }
 0x3fb   :  { %v382_v57 = vsub.f32 %v295_v48, %v378_v56 }
 0x3fd   :  { %v384_v58 = vmul.f32 1.442695, %v382_v57 }
 0x3fe   :  { %v475_v59 = vpop.permute.xlu1 %474  ;;  %v381_v60 = vpop.xlane.xlu0 %380 }
 0x3ff   :  { %4556 = vpow2.f32 %v384_v58  ;;  %v383_v61 = vsub.f32 %v373_v53, %v381_v60 }
 0x401   :  { %v386_v62 = vmul.f32 1.442695, %v383_v61 }
 0x402   :  { %v553_v63 = vpop.permute.xlu1 %552 }
 0x403   :  { %4558 = vpow2.f32 %v386_v62  ;;  %4203 = vmatpush3.xpose.msk.msra.mxu0 %vm222_vm2, %v553_v63 }
 0x404   :  { %4212 = vmatprep.subr.mxu0 %v4696_v36 }
 0x406   :  { %v631_v4 = vpop.permute.xlu1 %630 }
 0x409   :  { %v4557_v0 = vpop.eup %4556 }
 0x40a   :  { %v388_v1 = vsel %vm222_vm2, %v4557_v0, 0.0 }
 0x40b   :  { %389 = vadd.xlane.f32.xlu0 %v388_v1 }
 0x40d   :  { %v4559_v2 = vpop.eup %4558 }
 0x40e   :  { %v391_v3 = vsel %vm222_vm2, %v4559_v2, 0.0 }
 0x40f   :  { %392 = vadd.xlane.f32.xlu1 %v391_v3 }
 0x420   :  { %628 = vrot.lane.b32.xlu1 %v4880_v45, %s4701_s29 }
 0x421   :  { %398 = vrot.lane.b32.xlu0 %v4863_v41, %s4699_s27 }
 0x425   :  { %550 = vrot.lane.b32.xlu0 %v4871_v43, %s4701_s29 }
 0x498   :  { %v390_v5 = vpop.xlane.xlu0 %389 }
 0x499   :  { %4560 = vrcp.f32 %v390_v5 }
 0x49c   :  { %v393_v6 = vpop.xlane.xlu1 %392  ;;  %v399_v7 = vpop.permute.xlu0 %398 }
 0x49d   :  { %4562 = vrcp.f32 %v393_v6  ;;  %4193 = vmatpush3.msra.mxu1 %v399_v7 }
 0x49e   :  { %4197 = vmatprep.subr.mxu1 %v4696_v36 }
 0x4a0   :  { %v551_v8 = vpop.permute.xlu0 %550  ;;  %v629_v13 = vpop.permute.xlu1 %628 }
 0x4a1   :  { %4205 = vmatmul.mubr.msk.f32.vlgmr.msra.gmra.mrb[2].mxu0 %vm222_vm2, %v551_v8 }
 0x4a2   :  { %4214 = vmatprep.mubr.msk.f32.mxu0 %vm4697_vm1, %v4696_v36 }
 0x4a3   :  { %v4561_v9 = vpop.eup %4560 }
 0x4a4   :  { %v396_v10 = vmul.f32 %v4561_v9, %v4557_v0 }
 0x4a6   :  { %4195 = vmatmul.mubr.msk.f32.vlgmr.msra.gmra.mrb[4].mxu1 %vm222_vm2, %v396_v10 }
 0x4a7   :  { %v4563_v11 = vpop.eup %4562  ;;  %4198 = vmatpush3.msra.mxu1 %v475_v59  ;;  %4199 = vmatprep.mubr.msk.f32.mxu1 %vm4697_vm1, %v4696_v36 }
 0x4a8   :  { %v397_v12 = vmul.f32 %v4563_v11, %v4559_v2  ;;  %4207 = vmatprep.subr.mxu1 %v4696_v36 }
 0x4aa   :  { %4200 = vmatmul.mubr.msk.f32.vlgmr.msra.gmra.mrb[6].mxu1 %vm222_vm2, %v397_v12 }
 0x4ab   :  { %4209 = vmatprep.mubr.msk.f32.mxu1 %vm4697_vm1, %v4696_v36 }
 0x4ae   :  { %4208 = vmatpush3.xpose.msk.msra.mxu1 %vm222_vm2, %v631_v4 }
 0x4af   :  { %4217 = vmatprep.subr.mxu1 %v4696_v36 }
 0x4b1   :  { %4210 = vmatmul.mubr.msk.f32.vlgmr.msra.gmra.mrb[8].mxu1 %vm222_vm2, %v629_v13 }
 0x4b2   :  { %4219 = vmatprep.mubr.msk.f32.mxu1 %vm4697_vm1, %v4696_v36 }
 0x574   :  { %v624_v14 = vpop.f32.mrb[2].mxu0 }
 0x575   :  { %v625_v15 = vadd.f32 %v4890_v46, %v624_v14  ;;  %v4206_v16 = vpop.f32.mrb[3].mxu0 }
 0x577   :  { %v706_v17 = vsel %vm222_vm2, %v625_v15, -inf }
 0x578   :  { %707 = vmax.xlane.f32.xlu0 %v706_v17 }
 0x579   :  { %v4935_v18 = vpop.f32.mrb[4].mxu1 }
 0x57a   :  { %v4196_v19 = vpop.f32.mrb[5].mxu1 }
 0x57d   :  { %v4937_v20 = vpop.f32.mrb[6].mxu1 }
 0x57e   :  { %v4201_v21 = vpop.f32.mrb[7].mxu1 }
 0x584   :  { %v702_v22 = vpop.f32.mrb[8].mxu1 }
 0x585   :  { %v703_v23 = vadd.f32 %v4896_v50, %v702_v22  ;;  %v4211_v24 = vpop.f32.mrb[9].mxu1 }
 0x587   :  { %v709_v25 = vsel %vm222_vm2, %v703_v23, -inf }
 0x588   :  { %710 = vmax.xlane.f32.xlu1 %v709_v25 }
 0x599   :  { %804 = vrot.lane.b32.xlu1 %v4861_v39, %s5505_s0 }
 0x59d   :  { %882 = vrot.lane.b32.xlu1 %v4863_v41, %s5503_s30 }
 0x5a1   :  { %960 = vrot.lane.b32.xlu1 %v4861_v39, %s5503_s30  ;;  %s5521_s30 = smov 40  }
 0x5a5   :  { %958 = vrot.lane.b32.xlu1 %v4880_v45, %s5499_s20 }
 0x605   :  { %v708_v26 = vpop.xlane.xlu0 %707 }
 0x606   :  { %v712_v27 = vsub.f32 %v625_v15, %v708_v26 }
 0x608   :  { %v714_v28 = vmul.f32 1.442695, %v712_v27 }
 0x60a   :  { %4564 = vpow2.f32 %v714_v28 }
 0x614   :  { %v4565_v29 = vpop.eup %4564 }
 0x615   :  { %v711_v30 = vpop.xlane.xlu1 %710  ;;  %v718_v31 = vsel %vm222_vm2, %v4565_v29, 0.0 }
 0x616   :  { %719 = vadd.xlane.f32.xlu0 %v718_v31  ;;  %v713_v34 = vsub.f32 %v703_v23, %v711_v30 }
 0x618   :  { %v716_v37 = vmul.f32 1.442695, %v713_v34 }
 0x619   :  { %v805_v32 = vpop.permute.xlu1 %804 }
 0x61a   :  { %4218 = vmatpush3.msra.mxu1 %v805_v32  ;;  %4566 = vpow2.f32 %v716_v37 }
 0x61b   :  { %4227 = vmatprep.subr.mxu1 %v4696_v36 }
 0x61d   :  { %v883_v49 = vpop.permute.xlu1 %882 }
 0x621   :  { %v961_v54 = vpop.permute.xlu1 %960 }
 0x624   :  { %v4567_v38 = vpop.eup %4566 }
 0x625   :  { %v721_v40 = vsel %vm222_vm2, %v4567_v38, 0.0  ;;  %v959_v56 = vpop.permute.xlu1 %958 }
 0x62c   :  { %728 = vrot.lane.b32.xlu0 %v4863_v41, %s5505_s0  ;;  %s5520_s0 = smov 104  }
 0x64b   :  { %722 = vadd.xlane.f32.xlu0 %v721_v40 }
 0x661   :  { %880 = vrot.lane.b32.xlu0 %v4871_v43, %s5499_s20 }
 0x6a3   :  { %v720_v42 = vpop.xlane.xlu0 %719 }
 0x6a4   :  { %4568 = vrcp.f32 %v720_v42 }
 0x6a7   :  { %v729_v44 = vpop.permute.xlu0 %728 }
 0x6a8   :  { %4213 = vmatpush3.msra.mxu0 %v729_v44 }
 0x6a9   :  { %4222 = vmatprep.subr.mxu0 %v4696_v36 }
 0x6ae   :  { %v4569_v47 = vpop.eup %4568 }
 0x6af   :  { %v726_v48 = vmul.f32 %v4569_v47, %v4565_v29 }
 0x6b1   :  { %4215 = vmatmul.mubr.msk.f32.vlgmr.msra.gmra.mrb[4].mxu0 %vm222_vm2, %v726_v48 }
 0x6b2   :  { %4223 = vmatpush3.xpose.msk.msra.mxu0 %vm222_vm2, %v883_v49  ;;  %4224 = vmatprep.mubr.msk.f32.mxu0 %vm4697_vm1, %v4696_v36 }
 0x6b3   :  { %4232 = vmatprep.subr.mxu0 %v4696_v36 }
 0x6d8   :  { %v723_v51 = vpop.xlane.xlu0 %722 }
 0x6d9   :  { %4570 = vrcp.f32 %v723_v51 }
 0x6dc   :  { %v881_v52 = vpop.permute.xlu0 %880 }
 0x6dd   :  { %4225 = vmatmul.mubr.msk.f32.vlgmr.msra.gmra.mrb[6].mxu0 %vm222_vm2, %v881_v52 }
 0x6de   :  { %4234 = vmatprep.mubr.msk.f32.mxu0 %vm4697_vm1, %v4696_v36 }
 0x6e3   :  { %v4571_v53 = vpop.eup %4570 }
 0x6e4   :  { %v727_v55 = vmul.f32 %v4571_v53, %v4567_v38 }
 0x6e6   :  { %4220 = vmatmul.mubr.msk.f32.vlgmr.msra.gmra.mrb[10].mxu1 %vm222_vm2, %v727_v55 }
 0x6e7   :  { %4228 = vmatpush3.xpose.msk.msra.mxu1 %vm222_vm2, %v961_v54  ;;  %4229 = vmatprep.mubr.msk.f32.mxu1 %vm4697_vm1, %v4696_v36 }
 0x6e8   :  { %4237 = vmatprep.subr.mxu1 %v4696_v36 }
 0x6ea   :  { %4230 = vmatmul.mubr.msk.f32.vlgmr.msra.gmra.mrb[12].mxu1 %vm222_vm2, %v959_v56 }
 0x6eb   :  { %4239 = vmatprep.mubr.msk.f32.mxu1 %vm4697_vm1, %v4696_v36 }
 0x784   :  { %v4973_v57 = vpop.f32.mrb[4].mxu0 }
 0x785   :  { %v4216_v58 = vpop.f32.mrb[5].mxu0 }
 0x7b0   :  { %v954_v59 = vpop.f32.mrb[6].mxu0 }
 0x7b1   :  { %v955_v60 = vadd.f32 %v4890_v46, %v954_v59  ;;  %v4226_v61 = vpop.f32.mrb[7].mxu0 }
 0x7b3   :  { %v1036_v62 = vsel %vm222_vm2, %v955_v60, -inf }
 0x7b4   :  { %1037 = vmax.xlane.f32.xlu0 %v1036_v62 }
 0x7b9   :  { %v4977_v63 = vpop.f32.mrb[10].mxu1 }
 0x7ba   :  { %v4221_v0 = vpop.f32.mrb[11].mxu1 }
 0x7bd   :  { %v1032_v1 = vpop.f32.mrb[12].mxu1 }
 0x7be   :  { %v1033_v2 = vadd.f32 %v4896_v50, %v1032_v1  ;;  %v4231_v3 = vpop.f32.mrb[13].mxu1  ;;  %v1573_v1 = vld [vmem:[%s5471_s6 + $0x8] sm:$0xff] }
 0x7bf   :  { %v1574_v3 = vld [vmem:[%s5471_s6 + $0x10] sm:$0xff] }
 0x7c0   :  { %v1039_v4 = vsel %vm222_vm2, %v1033_v2, -inf }
 0x7c1   :  { %1040 = vmax.xlane.f32.xlu1 %v1039_v4  ;;  %v1575_v4 = vld [vmem:[%s5471_s6 + $0x18] sm:$0xff] }
 0x7d2   :  { %1134 = vrot.lane.b32.xlu1 %v4861_v39, %s5497_s21 }
 0x7d6   :  { %1212 = vrot.lane.b32.xlu1 %v4863_v41, %s5495_s1 }
 0x7da   :  { %1290 = vrot.lane.b32.xlu1 %v4861_v39, %s5495_s1  ;;  %s5518_s1 = smov 48  }
 0x7de   :  { %1288 = vrot.lane.b32.xlu1 %v4880_v45, %s5493_s22 }
 0x841   :  { %v1038_v5 = vpop.xlane.xlu0 %1037 }
 0x842   :  { %v1042_v6 = vsub.f32 %v955_v60, %v1038_v5  ;;  %v4458_v5 = vpack.c.bf16 %v1575_v4, %v1574_v3  ;;  %v1821_v3 = vld [vmem:[%s5477_s12 + $0x8] sm:$0xff] }
 0x844   :  { %v1044_v7 = vmul.f32 1.442695, %v1042_v6 }
 0x846   :  { %4572 = vpow2.f32 %v1044_v7 }
 0x84e   :  { %v1041_v8 = vpop.xlane.xlu1 %1040 }
 0x84f   :  { %v1043_v12 = vsub.f32 %v1033_v2, %v1041_v8 }
 0x850   :  { %v4573_v9 = vpop.eup %4572 }
 0x851   :  { %v1048_v10 = vsel %vm222_vm2, %v4573_v9, 0.0  ;;  %v1046_v13 = vmul.f32 1.442695, %v1043_v12 }
 0x852   :  { %1049 = vadd.xlane.f32.xlu0 %v1048_v10  ;;  %v1135_v11 = vpop.permute.xlu1 %1134 }
 0x853   :  { %4238 = vmatpush3.msra.mxu1 %v1135_v11  ;;  %4574 = vpow2.f32 %v1046_v13 }
 0x854   :  { %4247 = vmatprep.subr.mxu1 %v4696_v36 }
 0x856   :  { %v1213_v21 = vpop.permute.xlu1 %1212 }
 0x85a   :  { %v1291_v24 = vpop.permute.xlu1 %1290 }
 0x85d   :  { %v4575_v45 = vpop.eup %4574 }
 0x85e   :  { %v1051_v14 = vsel %vm222_vm2, %v4575_v45, 0.0  ;;  %v1289_v26 = vpop.permute.xlu1 %1288 }
 0x868   :  { %1058 = vrot.lane.b32.xlu0 %v4863_v41, %s5497_s21  ;;  %s5516_s21 = smov 80  }
 0x887   :  { %1052 = vadd.xlane.f32.xlu0 %v1051_v14 }
 0x89d   :  { %1210 = vrot.lane.b32.xlu0 %v4871_v43, %s5493_s22  ;;  %s5519_s22 = smov 72  }
 0x8df   :  { %v1050_v15 = vpop.xlane.xlu0 %1049 }
 0x8e0   :  { %4576 = vrcp.f32 %v1050_v15 }
 0x8e3   :  { %v1059_v16 = vpop.permute.xlu0 %1058 }
 0x8e4   :  { %4233 = vmatpush3.msra.mxu0 %v1059_v16 }
 0x8e5   :  { %4242 = vmatprep.subr.mxu0 %v4696_v36 }
 0x8ea   :  { %v4577_v17 = vpop.eup %4576 }
 0x8eb   :  { %v1056_v19 = vmul.f32 %v4577_v17, %v4573_v9 }
 0x8ed   :  { %4235 = vmatmul.mubr.msk.f32.vlgmr.msra.gmra.mrb[8].mxu0 %vm222_vm2, %v1056_v19 }
 0x8ee   :  { %4243 = vmatpush3.xpose.msk.msra.mxu0 %vm222_vm2, %v1213_v21  ;;  %4244 = vmatprep.mubr.msk.f32.mxu0 %vm4697_vm1, %v4696_v36 }
 0x8ef   :  { %4252 = vmatprep.subr.mxu0 %v4696_v36 }
 0x914   :  { %v1053_v22 = vpop.xlane.xlu0 %1052 }
 0x915   :  { %4578 = vrcp.f32 %v1053_v22 }
 0x918   :  { %v1211_v43 = vpop.permute.xlu0 %1210 }
 0x919   :  { %4245 = vmatmul.mubr.msk.f32.vlgmr.msra.gmra.mrb[10].mxu0 %vm222_vm2, %v1211_v43 }
 0x91a   :  { %4254 = vmatprep.mubr.msk.f32.mxu0 %vm4697_vm1, %v4696_v36 }
 0x91f   :  { %v4579_v23 = vpop.eup %4578 }
 0x920   :  { %v1057_v25 = vmul.f32 %v4579_v23, %v4575_v45 }
 0x922   :  { %4240 = vmatmul.mubr.msk.f32.vlgmr.msra.gmra.mrb[14].mxu1 %vm222_vm2, %v1057_v25 }
 0x923   :  { %4248 = vmatpush3.xpose.msk.msra.mxu1 %vm222_vm2, %v1291_v24  ;;  %4249 = vmatprep.mubr.msk.f32.mxu1 %vm4697_vm1, %v4696_v36 }
 0x924   :  { %4257 = vmatprep.subr.mxu1 %v4696_v36 }
 0x926   :  { %4250 = vmatmul.mubr.msk.f32.vlgmr.msra.gmra.mrb[16].mxu1 %vm222_vm2, %v1289_v26 }
 0x927   :  { %4259 = vmatprep.mubr.msk.f32.mxu1 %vm4697_vm1, %v4696_v36 }
 0x9c0   :  { %v1130_v27 = vpop.f32.mrb[8].mxu0 }
 0x9c1   :  { %v4236_v28 = vpop.f32.mrb[9].mxu0 }
 0x9ec   :  { %v1284_v29 = vpop.f32.mrb[10].mxu0 }
 0x9ed   :  { %v1285_v30 = vadd.f32 %v4890_v46, %v1284_v29  ;;  %v4246_v31 = vpop.f32.mrb[11].mxu0 }
 0x9ef   :  { %v1366_v32 = vsel %vm222_vm2, %v1285_v30, -inf }
 0x9f0   :  { %1367 = vmax.xlane.f32.xlu0 %v1366_v32 }
 0x9f5   :  { %v1206_v34 = vpop.f32.mrb[14].mxu1 }
 0x9f6   :  { %v4241_v37 = vpop.f32.mrb[15].mxu1 }
 0x9f9   :  { %v1362_v38 = vpop.f32.mrb[16].mxu1 }
 0x9fa   :  { %v1363_v40 = vadd.f32 %v4896_v50, %v1362_v38  ;;  %v4251_v42 = vpop.f32.mrb[17].mxu1 }
 0x9fc   :  { %v1369_v44 = vsel %vm222_vm2, %v1363_v40, -inf }
 0x9fd   :  { %1370 = vmax.xlane.f32.xlu1 %v1369_v44  ;;  %v1711_v44 = vld [vmem:[%s5475_s10 + $0x8] sm:$0xff] }
 0xa0e   :  { %1464 = vrot.lane.b32.xlu1 %v4861_v39, %s5489_s23 }
 0xa12   :  { %1542 = vrot.lane.b32.xlu1 %v4973_v57, %s5487_s24 }
 0xa16   :  { %1544 = vrot.lane.b32.xlu1 %v4977_v63, %s5487_s24  ;;  %s5501_s24 = smov 24  }
 0xa1a   :  { %1552 = vrot.lane.b32.xlu1 %v1206_v34, %s5491_s3 }
 0xa7d   :  { %v1368_v47 = vpop.xlane.xlu0 %1367 }
 0xa7e   :  { %v1372_v48 = vsub.f32 %v1285_v30, %v1368_v47 }
 0xa80   :  { %v1374_v49 = vmul.f32 1.442695, %v1372_v48  ;;  %v1712_v48 = vld [vmem:[%s5475_s10 + $0x10] sm:$0xff] }
 0xa82   :  { %4580 = vpow2.f32 %v1374_v49  ;;  %v1713_v49 = vld [vmem:[%s5475_s10 + $0x18] sm:$0xff] }
 0xa8a   :  { %v1371_v51 = vpop.xlane.xlu1 %1370 }
 0xa8b   :  { %v1373_v52 = vsub.f32 %v1363_v40, %v1371_v51  ;;  %v4466_v51 = vpack.c.bf16 %v1713_v49, %v1712_v48 }
 0xa8c   :  { %v4581_v53 = vpop.eup %4580 }
 0xa8d   :  { %v1376_v54 = vmul.f32 1.442695, %v1373_v52  ;;  %v1378_v39 = vsel %vm222_vm2, %v4581_v53, 0.0 }
 0xa8e   :  { %1379 = vadd.xlane.f32.xlu0 %v1378_v39  ;;  %v1465_v55 = vpop.permute.xlu1 %1464 }
 0xa8f   :  { %4582 = vpow2.f32 %v1376_v54  ;;  %4258 = vmatpush3.msra.mxu1 %v1465_v55 }
 0xa92   :  { %v1543_v10 = vpop.permute.xlu1 %1542 }
 0xa93   :  { %v1564_v13 = vsel %vm222_vm2, %v4935_v18, %v1543_v10  ;;  %v3963_v18 = vld [vmem:[%s5472_s7] ss:$0 sm:$0xff] }
 0xa96   :  { %v1545_v12 = vpop.permute.xlu1 %1544 }
 0xa97   :  { %v1565_v17 = vsel %vm222_vm2, %v4937_v20, %v1545_v12  ;;  %v1827_v12 = vld [vmem:[%s5477_s12 + $0x38] sm:$0xff] }
 0xa99   :  { %v4583_v56 = vpop.eup %4582 }
 0xa9a   :  { %v1381_v57 = vsel %vm222_vm2, %v4583_v56, 0.0  ;;  %v1553_v16 = vpop.permute.xlu1 %1552 }
 0xa9b   :  { %1382 = vadd.xlane.f32.xlu0 %v1381_v57  ;;  %v1568_v19 = vsel %vm1566_vm4, %v1565_v17, %v1553_v16 }
 0xab1   :  { %1388 = vrot.lane.b32.xlu0 %v4863_v41, %s5489_s23  ;;  %v1572_v41 = vld [vmem:[%s5471_s6] sm:$0xff]  ;;  %s5522_s23 = smov 8  }
 0xab2   :  { %v4454_v2 = vpack.c.bf16 %v1573_v1, %v1572_v41 }
 0xab5   :  { %1550 = vrot.lane.b32.xlu0 %v1130_v27, %s5491_s3 }
 0xb1b   :  { %v1380_v58 = vpop.xlane.xlu0 %1379 }
 0xb1c   :  { %4584 = vrcp.f32 %v1380_v58  ;;  %v3966_v58 = vld [vmem:[%s5473_s8] ss:$0 sm:$0xff] }
 0xb26   :  { %v4585_v60 = vpop.eup %4584 }
 0xb27   :  { %v1386_v61 = vmul.f32 %v4585_v60, %v4581_v53  ;;  %v3967_v60 = vld [vmem:[%s5474_s9] ss:$0 sm:$0xff] }
 0xb28   :  { %v1383_v59 = vpop.xlane.xlu0 %1382 }
 0xb29   :  { %4586 = vrcp.f32 %v1383_v59 }
 0xb2c   :  { %v1389_v62 = vpop.permute.xlu0 %1388 }
 0xb2d   :  { %4253 = vmatpush3.msra.mxu0 %v1389_v62 }
 0xb2e   :  { %4255 = vmatmul.mubr.msk.f32.vlgmr.msra.gmra.mrb[12].mxu0 %vm222_vm2, %v1386_v61  ;;  %4455 = vmatprep.subr.bf16.mxu0 %v4454_v2 }
 0xb2f   :  { %4457 = vmatpush3.bf16.msra.mxu0 %v4454_v2  ;;  %v1820_v2 = vld [vmem:[%s5477_s12] sm:$0xff] }
 0xb30   :  { %4459 = vmatprep.subr.bf16.mxu0 %v4458_v5  ;;  %v1551_v11 = vpop.permute.xlu0 %1550  ;;  %v4470_v4 = vpack.c.bf16 %v1821_v3, %v1820_v2 }
 0xb31   :  { %v1567_v45 = vsel %vm1566_vm4, %v1564_v13, %v1551_v11  ;;  %v1826_v11 = vld [vmem:[%s5477_s12 + $0x30] sm:$0xff] }
 0xb32   :  { %v4482_v13 = vpack.c.bf16 %v1827_v12, %v1826_v11  ;;  %v3975_v12 = vld [vmem:[%s5480_s15] ss:$0 sm:$0xff] }
 0xb33   :  { %v4587_v63 = vpop.eup %4586  ;;  %4461 = vmatpush3.bf16.msra.mxu0 %v4458_v5  ;;  %v1822_v5 = vld [vmem:[%s5477_s12 + $0x10] sm:$0xff] }
 0xb34   :  { %v1387_v0 = vmul.f32 %v4587_v63, %v4583_v56  ;;  %4471 = vmatprep.subr.bf16.mxu0 %v4470_v4 }
 0xb36   :  { %4260 = vmatmul.mubr.msk.f32.vlgmr.msra.gmra.mrb[18].mxu1 %vm222_vm2, %v1387_v0 }
 0xc01   :  { %v1460_v6 = vpop.f32.mrb[12].mxu0 }
 0xc02   :  { %1558 = vrot.lane.b32.xlu0 %v1460_v6, %s5501_s24  ;;  %v4256_v7 = vpop.f32.mrb[13].mxu0  ;;  %v1823_v6 = vld [vmem:[%s5477_s12 + $0x18] sm:$0xff] }
 0xc03   :  { %v4474_v7 = vpack.c.bf16 %v1823_v6, %v1822_v5 }
 0xc09   :  { %v1536_v8 = vpop.f32.mrb[18].mxu1 }
 0xc0a   :  { %1560 = vrot.lane.b32.xlu1 %v1536_v8, %s5501_s24  ;;  %v4261_v9 = vpop.f32.mrb[19].mxu1  ;;  %v1824_v8 = vld [vmem:[%s5477_s12 + $0x20] sm:$0xff]  ;;  %s5523_s24 = smov 16  }
 0xc0b   :  { %v1825_v9 = vld [vmem:[%s5477_s12 + $0x28] sm:$0xff] }
 0xc0c   :  { %v4478_v10 = vpack.c.bf16 %v1825_v9, %v1824_v8  ;;  %v3974_v8 = vld [vmem:[%s5479_s14] ss:$0 sm:$0xff] }
 0xc74   :  { %v1559_v14 = vpop.permute.xlu0 %1558 }
 0xc75   :  { %v1570_v15 = vsel %vm1569_vm3, %v1567_v45, %v1559_v14  ;;  %v3968_v45 = vld [vmem:[%s5476_s11] ss:$0 sm:$0xff] }
 0xc76   :  { %4270 = vmatprep.mubr.msk.f32.mxu0 %vm67_vm0, %v1570_v15 }
 0xc7c   :  { %v1561_v21 = vpop.permute.xlu1 %1560 }
 0xc7d   :  { %v1571_v22 = vsel %vm1569_vm3, %v1568_v19, %v1561_v21 }
 0xc7e   :  { %4271 = vmatmul.mubr.msk.f32.vlgmr.msra.gmra.mrb[14].mxu0 %vm67_vm0, %v1571_v22 }
 0xc7f   :  { %4473 = vmatpush3.bf16.msra.mxu0 %v4470_v4 }
 0xc80   :  { %4475 = vmatprep.subr.bf16.mxu0 %v4474_v7 }
 0xc83   :  { %4477 = vmatpush3.bf16.msra.mxu0 %v4474_v7 }
 0xc84   :  { %4479 = vmatprep.subr.bf16.mxu0 %v4478_v10 }
 0xc87   :  { %4481 = vmatpush3.bf16.msra.mxu0 %v4478_v10 }
 0xc88   :  { %4483 = vmatprep.subr.bf16.mxu0 %v4482_v13 }
 0xc8b   :  { %4485 = vmatpush3.bf16.msra.mxu0 %v4482_v13 }
 0xc8c   :  { %4324 = vmatprep.subr.mxu0 %v4696_v36 }
 0xd51   :  { %v4272_v43 = vpop.f32.mrb[14].mxu0 }
 0xd52   :  { %v1661_v23 = vadd.f32 %v4272_v43, %v3963_v18  ;;  %v1655_v24 = vpop.f32.mrb[15].mxu0 }
 0xd53   :  { %v1656_v25 = vadd.f32 %v3963_v18, %v1655_v24 }
 0xd54   :  { %v1665_v26 = vadd.f32 %v1661_v23, %v4848_v35 }
 0xd55   :  { %v1664_v27 = vadd.f32 %v1656_v25, %v4844_v33  ;;  %v1710_v33 = vld [vmem:[%s5475_s10] sm:$0xff] }
 0xd56   :  { %v1671_v20 = vsel %vm67_vm0, %v1665_v26, 0.0  ;;  %v4462_v47 = vpack.c.bf16 %v1711_v44, %v1710_v33 }
 0xd57   :  { %1672 = vadd.xlane.f32.xlu1 %v1671_v20  ;;  %v1668_v28 = vsel %vm67_vm0, %v1664_v27, 0.0 }
 0xd58   :  { %1669 = vadd.xlane.f32.xlu0 %v1668_v28  ;;  %4463 = vmatprep.subr.bf16.mxu1 %v4462_v47 }
 0xd59   :  { %4465 = vmatpush3.bf16.msra.mxu1 %v4462_v47 }
 0xd5a   :  { %4467 = vmatprep.subr.bf16.mxu1 %v4466_v51 }
 0xd5d   :  { %4469 = vmatpush3.bf16.msra.mxu1 %v4466_v51 }
 0xde4   :  { %v1673_v29 = vpop.xlane.xlu1 %1672 }
 0xde5   :  { %v1675_v30 = vmul.f32 0.03125, %v1673_v29  ;;  %v1670_v31 = vpop.xlane.xlu0 %1669 }
 0xde6   :  { %v1674_v32 = vmul.f32 0.03125, %v1670_v31 }
 0xde7   :  { %v1677_v34 = vsub.f32 %v1665_v26, %v1675_v30 }
 0xde8   :  { %v1676_v37 = vsub.f32 %v1664_v27, %v1674_v32 }
 0xde9   :  { %v1679_v42 = vmul.f32 %v1677_v34, %v1677_v34 }
 0xdea   :  { %v1678_v38 = vmul.f32 %v1676_v37, %v1676_v37 }
 0xdeb   :  { %v1683_v35 = vsel %vm67_vm0, %v1679_v42, 0.0 }
 0xdec   :  { %v1680_v40 = vsel %vm67_vm0, %v1678_v38, 0.0  ;;  %v3971_v38 = vld [vmem:[%s5478_s13] ss:$0 sm:$0xff] }
 0xded   :  { %1681 = vadd.xlane.f32.xlu0 %v1680_v40 }
 0xdf1   :  { %1684 = vadd.xlane.f32.xlu0 %v1683_v35 }
 0xe7a   :  { %v1682_v52 = vpop.xlane.xlu0 %1681 }
 0xe7b   :  { %v1686_v53 = vmul.f32 0.03125, %v1682_v52 }
 0xe7d   :  { %v1688_v54 = vadd.f32 1e-12, %v1686_v53 }
 0xe7e   :  { %v1685_v39 = vpop.xlane.xlu0 %1684 }
 0xe7f   :  { %4588 = vrsqrt.f32 %v1688_v54  ;;  %v1687_v55 = vmul.f32 0.03125, %v1685_v39 }
 0xe81   :  { %v1689_v56 = vadd.f32 1e-12, %v1687_v55 }
 0xe83   :  { %4590 = vrsqrt.f32 %v1689_v56 }
 0xe89   :  { %v4589_v57 = vpop.eup %4588 }
 0xe8a   :  { %v1692_v59 = vmul.f32 %v4589_v57, %v1676_v37 }
 0xe8c   :  { %v1700_v61 = vmul.f32 %v3966_v58, %v1692_v59 }
 0xe8d   :  { %v4591_v62 = vpop.eup %4590 }
 0xe8e   :  { %v1693_v63 = vmul.f32 %v4591_v62, %v1677_v34  ;;  %v1708_v0 = vadd.f32 %v3967_v60, %v1700_v61  ;;  %v3977_v61 = vld [vmem:[%s5469_s4 + $0x28] sm:$0xff] }
 0xe90   :  { %v1701_v41 = vmul.f32 %v3966_v58, %v1693_v63  ;;  %4281 = vmatprep.mubr.msk.f32.mxu1 %vm67_vm0, %v1708_v0  ;;  %v3978_v63 = vld [vmem:[%s5469_s4 + $0x30] sm:$0xff] }
 0xe92   :  { %v1709_v1 = vadd.f32 %v3967_v60, %v1701_v41  ;;  %v3976_v60 = vld [vmem:[%s5469_s4 + $0x20] sm:$0xff] }
 0xe93   :  { %v4486_v62 = vpack.c.bf16 %v3977_v61, %v3976_v60 }
 0xe94   :  { %4282 = vmatmul.mubr.msk.f32.vlgmr.msra.gmra.mrb[20].mxu1 %vm67_vm0, %v1709_v1 }
 0xe95   :  { %4487 = vmatprep.subr.bf16.mxu1 %v4486_v62 }
 0xe96   :  { %4489 = vmatpush3.bf16.msra.mxu1 %v4486_v62  ;;  %v5224_v62 = vld [vmem:[%s5514_s25] ss:$0 sm:$0xff] }
 0xf67   :  { %v4283_v14 = vpop.f32.mrb[20].mxu1 }
 0xf68   :  { %v1799_v15 = vadd.f32 %v4283_v14, %v3968_v45  ;;  %v1793_v16 = vpop.f32.mrb[21].mxu1 }
 0xf69   :  { %v1794_v17 = vadd.f32 %v3968_v45, %v1793_v16  ;;  %v3981_v16 = vld [vmem:[%s5470_s5 + $0x1] ss:$0 sm:$0xff] }
 0xf6a   :  { %v1805_v19 = vmul.f32 0.044715, %v1799_v15  ;;  %v1803_v32 = vmul.f32 0.5, %v1799_v15 }
 0xf6b   :  { %v1804_v21 = vmul.f32 0.044715, %v1794_v17  ;;  %v1802_v30 = vmul.f32 0.5, %v1794_v17 }
 0xf6c   :  { %v1807_v22 = vmul.f32 %v1805_v19, %v1799_v15 }
 0xf6d   :  { %v1806_v18 = vmul.f32 %v1804_v21, %v1794_v17 }
 0xf6e   :  { %v1809_v43 = vmul.f32 %v1807_v22, %v1799_v15 }
 0xf6f   :  { %v1808_v23 = vmul.f32 %v1806_v18, %v1794_v17 }
 0xf70   :  { %v1811_v24 = vadd.f32 %v1809_v43, %v1799_v15 }
 0xf71   :  { %v1810_v25 = vadd.f32 %v1808_v23, %v1794_v17 }
 0xf72   :  { %v1813_v26 = vmul.f32 0.7978846, %v1811_v24 }
 0xf73   :  { %v1812_v27 = vmul.f32 0.7978846, %v1810_v25 }
 0xf74   :  { %4592 = vtanh.f32 %v1813_v26 }
 0xf75   :  { %4594 = vtanh.f32 %v1812_v27 }
 0xf7e   :  { %v4593_v20 = vpop.eup %4592 }
 0xf7f   :  { %v4595_v28 = vpop.eup %4594  ;;  %v1817_v29 = vadd.f32 1.0, %v4593_v20 }
 0xf80   :  { %v1816_v31 = vadd.f32 1.0, %v4595_v28 }
 0xf81   :  { %v1819_v37 = vmul.f32 %v1817_v29, %v1803_v32 }
 0xf82   :  { %v1818_v34 = vmul.f32 %v1816_v31, %v1802_v30 }
 0xf84   :  { %4300 = vmatprep.mubr.msk.f32.mxu0 %vm1835_vm5, %v1818_v34 }
 0xf85   :  { %4301 = vmatmul.mubr.msk.f32.vlgmr.msra.gmra.mrb[16].mxu0 %vm1835_vm5, %v1819_v37 }
 0xf86   :  { %4326 = vmatprep.mubr.msk.f32.mxu0 %vm4697_vm1, %v4696_v36 }
0x1058   :  { %v4302_v40 = vpop.f32.mrb[16].mxu0 }
0x1059   :  { %v1914_v42 = vadd.f32 %v4302_v40, %v3971_v38  ;;  %v1908_v35 = vpop.f32.mrb[17].mxu0 }
0x105a   :  { %v1909_v33 = vadd.f32 %v3971_v38, %v1908_v35 }
0x105b   :  { %v1918_v44 = vadd.f32 %v1914_v42, %v1709_v1 }
0x105c   :  { %v1917_v47 = vadd.f32 %v1909_v33, %v1708_v0  ;;  %v3979_v0 = vld [vmem:[%s5469_s4 + $0x38] sm:$0xff] }
0x105d   :  { %v1924_v48 = vsel %vm67_vm0, %v1918_v44, 0.0  ;;  %v4490_v41 = vpack.c.bf16 %v3979_v0, %v3978_v63 }
0x105e   :  { %1925 = vadd.xlane.f32.xlu1 %v1924_v48  ;;  %v1921_v49 = vsel %vm67_vm0, %v1917_v47, 0.0 }
0x105f   :  { %1922 = vadd.xlane.f32.xlu0 %v1921_v49  ;;  %4491 = vmatprep.subr.bf16.mxu1 %v4490_v41 }
0x1060   :  { %4493 = vmatpush3.bf16.msra.mxu1 %v4490_v41 }
0x1061   :  { %4314 = vmatprep.subr.mxu1 %v4696_v36 }
0x10eb   :  { %v1926_v51 = vpop.xlane.xlu1 %1925 }
0x10ec   :  { %v1928_v52 = vmul.f32 0.03125, %v1926_v51  ;;  %v1923_v53 = vpop.xlane.xlu0 %1922 }
0x10ed   :  { %v1927_v54 = vmul.f32 0.03125, %v1923_v53 }
0x10ee   :  { %v1930_v39 = vsub.f32 %v1918_v44, %v1928_v52 }
0x10ef   :  { %v1929_v55 = vsub.f32 %v1917_v47, %v1927_v54 }
0x10f0   :  { %v1932_v56 = vmul.f32 %v1930_v39, %v1930_v39 }
0x10f1   :  { %v1931_v57 = vmul.f32 %v1929_v55, %v1929_v55 }
0x10f2   :  { %v1936_v58 = vsel %vm67_vm0, %v1932_v56, 0.0 }
0x10f3   :  { %1937 = vadd.xlane.f32.xlu1 %v1936_v58  ;;  %v1933_v59 = vsel %vm67_vm0, %v1931_v57, 0.0 }
0x10f4   :  { %1934 = vadd.xlane.f32.xlu0 %v1933_v59 }
0x1180   :  { %v1938_v1 = vpop.xlane.xlu1 %1937 }
0x1181   :  { %v1940_v2 = vmul.f32 0.03125, %v1938_v1  ;;  %v1935_v3 = vpop.xlane.xlu0 %1934 }
0x1182   :  { %v1939_v4 = vmul.f32 0.03125, %v1935_v3  ;;  %v5231_v3 = vld [vmem:[%s5514_s25 + $0x1] ss:$0 sm:$0xff]  ;;  %s5517_s25 = smov 112  }
0x1183   :  { %v1942_v5 = vadd.f32 1e-12, %v1940_v2 }
0x1184   :  { %v1941_v6 = vadd.f32 1e-12, %v1939_v4 }
0x1185   :  { %4596 = vrsqrt.f32 %v1942_v5 }
0x1186   :  { %4598 = vrsqrt.f32 %v1941_v6 }
0x118f   :  { %v4597_v7 = vpop.eup %4596 }
0x1190   :  { %v4599_v9 = vpop.eup %4598  ;;  %v1946_v10 = vmul.f32 %v4597_v7, %v1930_v39 }
0x1191   :  { %v1945_v11 = vmul.f32 %v4599_v9, %v1929_v55 }
0x1192   :  { %v1954_v13 = vmul.f32 %v3974_v8, %v1946_v10 }
0x1193   :  { %v1953_v45 = vmul.f32 %v3974_v8, %v1945_v11 }
0x1194   :  { %v5144_v15 = vadd.f32 %v3975_v12, %v1954_v13 }
0x1195   :  { %v5142_v14 = vadd.f32 %v3975_v12, %v1953_v45 }
0x1197   :  { %4311 = vmatprep.mubr.msk.f32.mxu1 %vm67_vm0, %v5142_v14 }
0x1198   :  { %4312 = vmatmul.mubr.msk.f32.vlgmr.msra.gmra.mrb[22].mxu1 %vm67_vm0, %v5144_v15 }
0x1199   :  { %4316 = vmatprep.mubr.msk.f32.mxu1 %vm4697_vm1, %v4696_v36 }
0x126b   :  { %v4313_v17 = vpop.f32.mrb[22].mxu1 }
0x126c   :  { %v5155_v19 = vadd.f32 %v4313_v17, %v3981_v16  ;;  %v2048_v21 = vpop.f32.mrb[23].mxu1 }
0x126d   :  { %v5157_v22 = vadd.f32 %v3981_v16, %v2048_v21 }
0x126e   :  { %2138 = vrot.lane.b32.xlu1 %v5155_v19, %s4698_s2  ;;  %v5174_v24 = vmul.f32 0.35355338, %v5155_v19 }
0x126f   :  { %2060 = vrot.lane.b32.xlu0 %v5157_v22, %s4698_s2  ;;  %v5165_v43 = vmul.f32 0.35355338, %v5157_v22 }
0x12e0   :  { %v2139_v23 = vpop.permute.xlu1 %2138 }
0x12e1   :  { %v2061_v18 = vpop.permute.xlu0 %2060 }
0x12e2   :  { %4315 = vmatpush3.xpose.msk.msra.mxu1 %vm222_vm2, %v2061_v18 }
0x12e3   :  { %4319 = vmatprep.subr.mxu1 %v4696_v36 }
0x12e5   :  { %4317 = vmatmul.mubr.msk.f32.vlgmr.msra.gmra.mrb[24].mxu1 %vm222_vm2, %v5165_v43 }
0x12e6   :  { %4320 = vmatpush3.xpose.msk.msra.mxu1 %vm222_vm2, %v2139_v23  ;;  %4321 = vmatprep.mubr.msk.f32.mxu1 %vm4697_vm1, %v4696_v36 }
0x12e7   :  { %4329 = vmatprep.subr.mxu1 %v4696_v36 }
0x12e9   :  { %4322 = vmatmul.mubr.msk.f32.vlgmr.msra.gmra.mrb[26].mxu1 %vm222_vm2, %v5174_v24 }
0x12ea   :  { %4331 = vmatprep.mubr.msk.f32.mxu1 %vm4697_vm1, %v4696_v36 }
0x13b8   :  { %v2133_v25 = vpop.f32.mrb[24].mxu1 }
0x13b9   :  { %v2134_v26 = vadd.f32 %v4890_v46, %v2133_v25  ;;  %v4318_v27 = vpop.f32.mrb[25].mxu1 }
0x13bb   :  { %v2215_v20 = vsel %vm222_vm2, %v2134_v26, -inf }
0x13bc   :  { %2216 = vmax.xlane.f32.xlu1 %v2215_v20  ;;  %v2211_v28 = vpop.f32.mrb[26].mxu1 }
0x13bd   :  { %v2212_v29 = vadd.f32 %v4896_v50, %v2211_v28  ;;  %v4323_v30 = vpop.f32.mrb[27].mxu1 }
0x13bf   :  { %v2218_v31 = vsel %vm222_vm2, %v2212_v29, -inf }
0x13c0   :  { %2219 = vmax.xlane.f32.xlu0 %v2218_v31 }
0x13cd   :  { %2313 = vrot.lane.b32.xlu1 %v5155_v19, %s4699_s27 }
0x13d1   :  { %2391 = vrot.lane.b32.xlu1 %v5157_v22, %s4700_s28 }
0x13d5   :  { %2469 = vrot.lane.b32.xlu1 %v5155_v19, %s4700_s28 }
0x13d6   :  { %2237 = vrot.lane.b32.xlu0 %v5157_v22, %s4699_s27 }
0x1449   :  { %v2217_v46 = vpop.xlane.xlu1 %2216 }
0x144a   :  { %v2221_v32 = vsub.f32 %v2134_v26, %v2217_v46 }
0x144c   :  { %v2223_v34 = vmul.f32 1.442695, %v2221_v32 }
0x144d   :  { %v2314_v50 = vpop.permute.xlu1 %2313  ;;  %v2220_v37 = vpop.xlane.xlu0 %2219 }
0x144e   :  { %4600 = vpow2.f32 %v2223_v34  ;;  %v2222_v38 = vsub.f32 %v2212_v29, %v2220_v37  ;;  %4330 = vmatpush3.msra.mxu1 %v2314_v50 }
0x144f   :  { %4339 = vmatprep.subr.mxu1 %v4696_v36 }
0x1450   :  { %v2225_v40 = vmul.f32 1.442695, %v2222_v38 }
0x1451   :  { %v2238_v42 = vpop.permute.xlu0 %2237  ;;  %v2392_v48 = vpop.permute.xlu1 %2391 }
0x1452   :  { %4602 = vpow2.f32 %v2225_v40  ;;  %4325 = vmatpush3.msra.mxu0 %v2238_v42 }
0x1453   :  { %4334 = vmatprep.subr.mxu0 %v4696_v36 }
0x1455   :  { %v2470_v49 = vpop.permute.xlu1 %2469 }
0x1458   :  { %v4601_v35 = vpop.eup %4600 }
0x1459   :  { %v2227_v33 = vsel %vm222_vm2, %v4601_v35, 0.0 }
0x145a   :  { %2228 = vadd.xlane.f32.xlu0 %v2227_v33 }
0x145c   :  { %v4603_v44 = vpop.eup %4602 }
0x145d   :  { %v2230_v47 = vsel %vm222_vm2, %v4603_v44, 0.0 }
0x145e   :  { %2231 = vadd.xlane.f32.xlu1 %v2230_v47 }
0x146f   :  { %2467 = vrot.lane.b32.xlu1 %v5174_v24, %s4701_s29 }
0x1470   :  { %2389 = vrot.lane.b32.xlu0 %v5165_v43, %s4701_s29  ;;  %s5515_s29 = smov 56  }
0x14e7   :  { %v2229_v51 = vpop.xlane.xlu0 %2228 }
0x14e8   :  { %4604 = vrcp.f32 %v2229_v51 }
0x14eb   :  { %v2232_v52 = vpop.xlane.xlu1 %2231  ;;  %v2390_v56 = vpop.permute.xlu0 %2389 }
0x14ec   :  { %4606 = vrcp.f32 %v2232_v52 }
0x14ef   :  { %v2468_v57 = vpop.permute.xlu1 %2467 }
0x14f2   :  { %v4605_v53 = vpop.eup %4604 }
0x14f3   :  { %v2235_v54 = vmul.f32 %v4605_v53, %v4601_v35 }
0x14f5   :  { %4327 = vmatmul.mubr.msk.f32.vlgmr.msra.gmra.mrb[18].mxu0 %vm222_vm2, %v2235_v54 }
0x14f6   :  { %v4607_v39 = vpop.eup %4606  ;;  %4335 = vmatpush3.xpose.msk.msra.mxu0 %vm222_vm2, %v2392_v48  ;;  %4336 = vmatprep.mubr.msk.f32.mxu0 %vm4697_vm1, %v4696_v36 }
0x14f7   :  { %v2236_v55 = vmul.f32 %v4607_v39, %v4603_v44  ;;  %4344 = vmatprep.subr.mxu0 %v4696_v36 }
0x14f9   :  { %4332 = vmatmul.mubr.msk.f32.vlgmr.msra.gmra.mrb[28].mxu1 %vm222_vm2, %v2236_v55  ;;  %4337 = vmatmul.mubr.msk.f32.vlgmr.msra.gmra.mrb[20].mxu0 %vm222_vm2, %v2390_v56 }
0x14fa   :  { %4340 = vmatpush3.xpose.msk.msra.mxu1 %vm222_vm2, %v2470_v49  ;;  %4341 = vmatprep.mubr.msk.f32.mxu1 %vm4697_vm1, %v4696_v36 }
0x14fb   :  { %4349 = vmatprep.subr.mxu1 %v4696_v36  ;;  %4346 = vmatprep.mubr.msk.f32.mxu0 %vm4697_vm1, %v4696_v36 }
0x14fd   :  { %4342 = vmatmul.mubr.msk.f32.vlgmr.msra.gmra.mrb[30].mxu1 %vm222_vm2, %v2468_v57 }
0x14fe   :  { %4351 = vmatprep.mubr.msk.f32.mxu1 %vm4697_vm1, %v4696_v36 }
0x15c8   :  { %v5217_v58 = vpop.f32.mrb[18].mxu0 }
0x15c9   :  { %v4328_v59 = vpop.f32.mrb[19].mxu0 }
0x15cc   :  { %v5219_v60 = vpop.f32.mrb[28].mxu1  ;;  %v2463_v61 = vpop.f32.mrb[20].mxu0 }
0x15cd   :  { %v2464_v63 = vadd.f32 %v5224_v62, %v2463_v61  ;;  %v4333_v0 = vpop.f32.mrb[29].mxu1  ;;  %v4338_v41 = vpop.f32.mrb[21].mxu0 }
0x15cf   :  { %v2545_v1 = vsel %vm222_vm2, %v2464_v63, -inf }
0x15d0   :  { %2546 = vmax.xlane.f32.xlu0 %v2545_v1  ;;  %v2541_v2 = vpop.f32.mrb[30].mxu1 }
0x15d1   :  { %v2542_v4 = vadd.f32 %v5231_v3, %v2541_v2  ;;  %v4343_v5 = vpop.f32.mrb[31].mxu1 }
0x15d3   :  { %v2548_v6 = vsel %vm222_vm2, %v2542_v4, -inf }
0x15d4   :  { %2549 = vmax.xlane.f32.xlu1 %v2548_v6 }
0x15e5   :  { %2643 = vrot.lane.b32.xlu1 %v5155_v19, %s5515_s29 }
0x15e6   :  { %2567 = vrot.lane.b32.xlu0 %v5157_v22, %s5515_s29  ;;  %s5524_s29 = smov 24  }
0x15e9   :  { %2721 = vrot.lane.b32.xlu1 %v5157_v22, %s5516_s21 }
0x15ed   :  { %2799 = vrot.lane.b32.xlu1 %v5155_v19, %s5516_s21 }
0x15f1   :  { %2797 = vrot.lane.b32.xlu1 %v5174_v24, %s5517_s25 }
0x165d   :  { %v2547_v7 = vpop.xlane.xlu0 %2546 }
0x165e   :  { %v2551_v8 = vsub.f32 %v2464_v63, %v2547_v7 }
0x1660   :  { %v2553_v9 = vmul.f32 1.442695, %v2551_v8 }
0x1661   :  { %v2568_v10 = vpop.permute.xlu0 %2567  ;;  %v2550_v11 = vpop.xlane.xlu1 %2549 }
0x1662   :  { %4608 = vpow2.f32 %v2553_v9  ;;  %v2552_v12 = vsub.f32 %v2542_v4, %v2550_v11  ;;  %4345 = vmatpush3.msra.mxu0 %v2568_v10 }
0x1663   :  { %4354 = vmatprep.subr.mxu0 %v4696_v36 }
0x1664   :  { %v2555_v13 = vmul.f32 1.442695, %v2552_v12 }
0x1665   :  { %v2644_v45 = vpop.permute.xlu1 %2643 }
0x1666   :  { %4610 = vpow2.f32 %v2555_v13  ;;  %4350 = vmatpush3.msra.mxu1 %v2644_v45 }
0x1667   :  { %4359 = vmatprep.subr.mxu1 %v4696_v36 }
0x1669   :  { %v2722_v26 = vpop.permute.xlu1 %2721 }
0x166c   :  { %v4609_v16 = vpop.eup %4608 }
0x166d   :  { %v2557_v17 = vsel %vm222_vm2, %v4609_v16, 0.0  ;;  %v2800_v29 = vpop.permute.xlu1 %2799 }
0x166e   :  { %2558 = vadd.xlane.f32.xlu0 %v2557_v17 }
0x1670   :  { %v4611_v21 = vpop.eup %4610 }
0x1671   :  { %v2560_v18 = vsel %vm222_vm2, %v4611_v21, 0.0  ;;  %v2798_v46 = vpop.permute.xlu1 %2797 }
0x1672   :  { %2561 = vadd.xlane.f32.xlu0 %v2560_v18 }
0x1688   :  { %2719 = vrot.lane.b32.xlu0 %v5165_v43, %s5517_s25 }
0x16fb   :  { %v2559_v23 = vpop.xlane.xlu0 %2558 }
0x16fc   :  { %4612 = vrcp.f32 %v2559_v23 }
0x16ff   :  { %v2562_v25 = vpop.xlane.xlu0 %2561 }
0x1700   :  { %4614 = vrcp.f32 %v2562_v25 }
0x1703   :  { %v2720_v31 = vpop.permute.xlu0 %2719 }
0x1706   :  { %v4613_v27 = vpop.eup %4612 }
0x1707   :  { %v2565_v20 = vmul.f32 %v4613_v27, %v4609_v16 }
0x1709   :  { %4347 = vmatmul.mubr.msk.f32.vlgmr.msra.gmra.mrb[22].mxu0 %vm222_vm2, %v2565_v20 }
0x170a   :  { %v4615_v28 = vpop.eup %4614  ;;  %4355 = vmatpush3.xpose.msk.msra.mxu0 %vm222_vm2, %v2722_v26  ;;  %4356 = vmatprep.mubr.msk.f32.mxu0 %vm4697_vm1, %v4696_v36 }
0x170b   :  { %v2566_v30 = vmul.f32 %v4615_v28, %v4611_v21  ;;  %4364 = vmatprep.subr.mxu0 %v4696_v36 }
0x170d   :  { %4352 = vmatmul.mubr.msk.f32.vlgmr.msra.gmra.mrb[32].mxu1 %vm222_vm2, %v2566_v30  ;;  %4357 = vmatmul.mubr.msk.f32.vlgmr.msra.gmra.mrb[24].mxu0 %vm222_vm2, %v2720_v31 }
0x170e   :  { %4360 = vmatpush3.xpose.msk.msra.mxu1 %vm222_vm2, %v2800_v29  ;;  %4361 = vmatprep.mubr.msk.f32.mxu1 %vm4697_vm1, %v4696_v36 }
0x170f   :  { %4369 = vmatprep.subr.mxu1 %v4696_v36  ;;  %4366 = vmatprep.mubr.msk.f32.mxu0 %vm4697_vm1, %v4696_v36 }
0x1711   :  { %4362 = vmatmul.mubr.msk.f32.vlgmr.msra.gmra.mrb[34].mxu1 %vm222_vm2, %v2798_v46 }
0x1712   :  { %4371 = vmatprep.mubr.msk.f32.mxu1 %vm4697_vm1, %v4696_v36 }
0x17dc   :  { %v5267_v32 = vpop.f32.mrb[22].mxu0 }
0x17dd   :  { %v4348_v34 = vpop.f32.mrb[23].mxu0 }
0x17e0   :  { %v5269_v50 = vpop.f32.mrb[32].mxu1  ;;  %v2793_v37 = vpop.f32.mrb[24].mxu0 }
0x17e1   :  { %v2794_v38 = vadd.f32 %v5224_v62, %v2793_v37  ;;  %v4353_v40 = vpop.f32.mrb[33].mxu1  ;;  %v4358_v42 = vpop.f32.mrb[25].mxu0 }
0x17e2   :  { %v4009_v42 = vld [vmem:[%s5471_s6 + $0x28] sm:$0xff] }
0x17e3   :  { %v2875_v35 = vsel %vm222_vm2, %v2794_v38, -inf }
0x17e4   :  { %2876 = vmax.xlane.f32.xlu0 %v2875_v35  ;;  %v2871_v33 = vpop.f32.mrb[34].mxu1 }
0x17e5   :  { %v2872_v44 = vadd.f32 %v5231_v3, %v2871_v33  ;;  %v4363_v47 = vpop.f32.mrb[35].mxu1  ;;  %v4010_v33 = vld [vmem:[%s5471_s6 + $0x30] sm:$0xff] }
0x17e7   :  { %v2878_v48 = vsel %vm222_vm2, %v2872_v44, -inf }
0x17e8   :  { %2879 = vmax.xlane.f32.xlu1 %v2878_v48 }
0x17f9   :  { %2973 = vrot.lane.b32.xlu1 %v5155_v19, %s5518_s1 }
0x17fa   :  { %2897 = vrot.lane.b32.xlu0 %v5157_v22, %s5518_s1 }
0x17fd   :  { %3051 = vrot.lane.b32.xlu1 %v5157_v22, %s5519_s22 }
0x1801   :  { %3129 = vrot.lane.b32.xlu1 %v5155_v19, %s5519_s22 }
0x1805   :  { %3127 = vrot.lane.b32.xlu1 %v5174_v24, %s5520_s0 }
0x1871   :  { %v2877_v49 = vpop.xlane.xlu0 %2876 }
0x1872   :  { %v2881_v51 = vsub.f32 %v2794_v38, %v2877_v49 }
0x1874   :  { %v2883_v52 = vmul.f32 1.442695, %v2881_v51 }
0x1875   :  { %v2898_v53 = vpop.permute.xlu0 %2897  ;;  %v2880_v54 = vpop.xlane.xlu1 %2879 }
0x1876   :  { %4616 = vpow2.f32 %v2883_v52  ;;  %v2882_v39 = vsub.f32 %v2872_v44, %v2880_v54  ;;  %4365 = vmatpush3.msra.mxu0 %v2898_v53  ;;  %v4011_v44 = vld [vmem:[%s5471_s6 + $0x38] sm:$0xff] }
0x1877   :  { %4374 = vmatprep.subr.mxu0 %v4696_v36  ;;  %v4498_v47 = vpack.c.bf16 %v4011_v44, %v4010_v33  ;;  %v4030_v33 = vld [vmem:[%s5477_s12 + $0x50] sm:$0xff]  ;;  %v4031_v44 = vld [vmem:[%s5477_s12 + $0x58] sm:$0xff] }
0x1878   :  { %v2885_v55 = vmul.f32 1.442695, %v2882_v39 }
0x1879   :  { %v2974_v56 = vpop.permute.xlu1 %2973 }
0x187a   :  { %4618 = vpow2.f32 %v2885_v55  ;;  %4370 = vmatpush3.msra.mxu1 %v2974_v56 }
0x187b   :  { %4379 = vmatprep.subr.mxu1 %v4696_v36 }
0x187d   :  { %v3052_v41 = vpop.permute.xlu1 %3051 }
0x1880   :  { %v4617_v57 = vpop.eup %4616 }
0x1881   :  { %v2887_v59 = vsel %vm222_vm2, %v4617_v57, 0.0  ;;  %v3130_v5 = vpop.permute.xlu1 %3129 }
0x1882   :  { %2888 = vadd.xlane.f32.xlu0 %v2887_v59 }
0x1884   :  { %v4619_v24 = vpop.eup %4618 }
0x1885   :  { %v2890_v61 = vsel %vm222_vm2, %v4619_v24, 0.0  ;;  %v3128_v7 = vpop.permute.xlu1 %3127 }
0x1886   :  { %2891 = vadd.xlane.f32.xlu0 %v2890_v61 }
0x189c   :  { %3049 = vrot.lane.b32.xlu0 %v5165_v43, %s5520_s0 }
0x190f   :  { %v2889_v63 = vpop.xlane.xlu0 %2888 }
0x1910   :  { %4620 = vrcp.f32 %v2889_v63 }
0x1913   :  { %v2892_v0 = vpop.xlane.xlu0 %2891 }
0x1914   :  { %4622 = vrcp.f32 %v2892_v0 }
0x1917   :  { %v3050_v43 = vpop.permute.xlu0 %3049 }
0x191a   :  { %v4621_v1 = vpop.eup %4620 }
0x191b   :  { %v2895_v2 = vmul.f32 %v4621_v1, %v4617_v57 }
0x191d   :  { %4367 = vmatmul.mubr.msk.f32.vlgmr.msra.gmra.mrb[26].mxu0 %vm222_vm2, %v2895_v2 }
0x191e   :  { %v4623_v4 = vpop.eup %4622  ;;  %4375 = vmatpush3.xpose.msk.msra.mxu0 %vm222_vm2, %v3052_v41  ;;  %4376 = vmatprep.mubr.msk.f32.mxu0 %vm4697_vm1, %v4696_v36 }
0x191f   :  { %v2896_v6 = vmul.f32 %v4623_v4, %v4619_v24  ;;  %4384 = vmatprep.subr.mxu0 %v4696_v36 }
0x1921   :  { %4372 = vmatmul.mubr.msk.f32.vlgmr.msra.gmra.mrb[36].mxu1 %vm222_vm2, %v2896_v6  ;;  %4377 = vmatmul.mubr.msk.f32.vlgmr.msra.gmra.mrb[28].mxu0 %vm222_vm2, %v3050_v43 }
0x1922   :  { %4380 = vmatpush3.xpose.msk.msra.mxu1 %vm222_vm2, %v3130_v5  ;;  %4381 = vmatprep.mubr.msk.f32.mxu1 %vm4697_vm1, %v4696_v36 }
0x1923   :  { %4389 = vmatprep.subr.mxu1 %v4696_v36  ;;  %4386 = vmatprep.mubr.msk.f32.mxu0 %vm4697_vm1, %v4696_v36 }
0x1925   :  { %4382 = vmatmul.mubr.msk.f32.vlgmr.msra.gmra.mrb[38].mxu1 %vm222_vm2, %v3128_v7 }
0x1926   :  { %4391 = vmatprep.mubr.msk.f32.mxu1 %vm4697_vm1, %v4696_v36 }
0x19f0   :  { %v2969_v8 = vpop.f32.mrb[26].mxu0 }
0x19f1   :  { %v4368_v9 = vpop.f32.mrb[27].mxu0 }
0x19f4   :  { %v3045_v10 = vpop.f32.mrb[36].mxu1  ;;  %v3123_v11 = vpop.f32.mrb[28].mxu0 }
0x19f5   :  { %v3124_v12 = vadd.f32 %v5224_v62, %v3123_v11  ;;  %v4373_v13 = vpop.f32.mrb[37].mxu1  ;;  %v4378_v45 = vpop.f32.mrb[29].mxu0 }
0x19f7   :  { %v3205_v16 = vsel %vm222_vm2, %v3124_v12, -inf }
0x19f8   :  { %3206 = vmax.xlane.f32.xlu0 %v3205_v16  ;;  %v3201_v17 = vpop.f32.mrb[38].mxu1 }
0x19f9   :  { %v3202_v21 = vadd.f32 %v5231_v3, %v3201_v17  ;;  %v4383_v18 = vpop.f32.mrb[39].mxu1 }
0x19fb   :  { %v3208_v23 = vsel %vm222_vm2, %v3202_v21, -inf }
0x19fc   :  { %3209 = vmax.xlane.f32.xlu1 %v3208_v23  ;;  %v4022_v23 = vld [vmem:[%s5475_s10 + $0x30] sm:$0xff] }
0x1a0d   :  { %3303 = vrot.lane.b32.xlu1 %v5155_v19, %s5521_s30 }
0x1a11   :  { %3381 = vrot.lane.b32.xlu1 %v5267_v32, %s5522_s23 }
0x1a15   :  { %3383 = vrot.lane.b32.xlu1 %v5269_v50, %s5522_s23 }
0x1a19   :  { %3391 = vrot.lane.b32.xlu1 %v3045_v10, %s5523_s24 }
0x1a85   :  { %v3207_v62 = vpop.xlane.xlu0 %3206 }
0x1a86   :  { %v3211_v25 = vsub.f32 %v3124_v12, %v3207_v62  ;;  %v4023_v62 = vld [vmem:[%s5475_s10 + $0x38] sm:$0xff] }
0x1a88   :  { %v3213_v26 = vmul.f32 1.442695, %v3211_v25  ;;  %v4506_v25 = vpack.c.bf16 %v4023_v62, %v4022_v23 }
0x1a89   :  { %v3210_v27 = vpop.xlane.xlu1 %3209 }
0x1a8a   :  { %4624 = vpow2.f32 %v3213_v26  ;;  %v3212_v3 = vsub.f32 %v3202_v21, %v3210_v27  ;;  %v4021_v21 = vld [vmem:[%s5475_s10 + $0x28] sm:$0xff] }
0x1a8c   :  { %v3215_v20 = vmul.f32 1.442695, %v3212_v3 }
0x1a8d   :  { %v3304_v28 = vpop.permute.xlu1 %3303 }
0x1a8e   :  { %4626 = vpow2.f32 %v3215_v20  ;;  %4390 = vmatpush3.msra.mxu1 %v3304_v28 }
0x1a91   :  { %v3382_v53 = vpop.permute.xlu1 %3381 }
0x1a92   :  { %v3403_v55 = vsel %vm222_vm2, %v5217_v58, %v3382_v53  ;;  %v4013_v58 = vld [vmem:[%s5472_s7 + $0x1] ss:$0 sm:$0xff] }
0x1a94   :  { %v4625_v29 = vpop.eup %4624 }
0x1a95   :  { %v3217_v19 = vsel %vm222_vm2, %v4625_v29, 0.0  ;;  %v3384_v54 = vpop.permute.xlu1 %3383 }
0x1a96   :  { %3218 = vadd.xlane.f32.xlu0 %v3217_v19  ;;  %v3404_v61 = vsel %vm222_vm2, %v5219_v60, %v3384_v54  ;;  %v4025_v54 = vld [vmem:[%s5476_s11 + $0x1] ss:$0 sm:$0xff] }
0x1a98   :  { %v4627_v30 = vpop.eup %4626 }
0x1a99   :  { %v3220_v31 = vsel %vm222_vm2, %v4627_v30, 0.0  ;;  %v3392_v56 = vpop.permute.xlu1 %3391 }
0x1a9a   :  { %3221 = vadd.xlane.f32.xlu0 %v3220_v31  ;;  %v3406_v63 = vsel %vm1566_vm4, %v3404_v61, %v3392_v56 }
0x1ab0   :  { %3227 = vrot.lane.b32.xlu0 %v5157_v22, %s5521_s30  ;;  %v4008_v22 = vld [vmem:[%s5471_s6 + $0x20] sm:$0xff] }
0x1ab1   :  { %v4494_v35 = vpack.c.bf16 %v4009_v42, %v4008_v22  ;;  %v4028_v22 = vld [vmem:[%s5477_s12 + $0x40] sm:$0xff]  ;;  %v4029_v42 = vld [vmem:[%s5477_s12 + $0x48] sm:$0xff] }
0x1ab4   :  { %3389 = vrot.lane.b32.xlu0 %v2969_v8, %s5523_s24 }
0x1b23   :  { %v3219_v46 = vpop.xlane.xlu0 %3218 }
0x1b24   :  { %4628 = vrcp.f32 %v3219_v46  ;;  %v4019_v46 = vld [vmem:[%s5474_s9 + $0x1] ss:$0 sm:$0xff] }
0x1b27   :  { %v3222_v32 = vpop.xlane.xlu0 %3221 }
0x1b28   :  { %4630 = vrcp.f32 %v3222_v32 }
0x1b2b   :  { %v3228_v34 = vpop.permute.xlu0 %3227 }
0x1b2c   :  { %4385 = vmatpush3.msra.mxu0 %v3228_v34 }
0x1b2d   :  { %4495 = vmatprep.subr.bf16.mxu0 %v4494_v35 }
0x1b2e   :  { %v4629_v50 = vpop.eup %4628 }
0x1b2f   :  { %v3225_v37 = vmul.f32 %v4629_v50, %v4625_v29  ;;  %v3390_v39 = vpop.permute.xlu0 %3389 }
0x1b30   :  { %v3405_v57 = vsel %vm1566_vm4, %v3403_v55, %v3390_v39 }
0x1b31   :  { %4387 = vmatmul.mubr.msk.f32.vlgmr.msra.gmra.mrb[30].mxu0 %vm222_vm2, %v3225_v37 }
0x1b32   :  { %v4631_v38 = vpop.eup %4630  ;;  %4497 = vmatpush3.bf16.msra.mxu0 %v4494_v35  ;;  %v4510_v35 = vpack.c.bf16 %v4029_v42, %v4028_v22 }
0x1b33   :  { %v3226_v40 = vmul.f32 %v4631_v38, %v4627_v30  ;;  %4499 = vmatprep.subr.bf16.mxu0 %v4498_v47  ;;  %v4018_v30 = vld [vmem:[%s5473_s8 + $0x1] ss:$0 sm:$0xff] }
0x1b35   :  { %4392 = vmatmul.mubr.msk.f32.vlgmr.msra.gmra.mrb[40].mxu1 %vm222_vm2, %v3226_v40 }
0x1b36   :  { %4501 = vmatpush3.bf16.msra.mxu0 %v4498_v47  ;;  %v4514_v47 = vpack.c.bf16 %v4031_v44, %v4030_v33  ;;  %v4042_v44 = vld [vmem:[%s5479_s14 + $0x1] ss:$0 sm:$0xff]  ;;  %s4713_s14 = smov [#allocation4]  }
0x1b37   :  { %4511 = vmatprep.subr.bf16.mxu0 %v4510_v35  ;;  %s3917_s6 = sshll.u32 %s4713_s14, 4  ;;  %s3918_s6 = int_to_ptr.vmem [resolvable:$true] %s3917_s6 }
0x1b38   :  { %s4648_s21 = scalar_lea.vmem %s3918_s6, 256  ;;  %p4653_p1 = scmp.lt.s32.totalorder %s3918_s6, %s3918_s6 }
0x1b39   :  { %p4649_p0 = scmp.ne.s32.totalorder %s3918_s6, %s4648_s21  ;;  %p4654_p2 = scmp.lt.s32.totalorder %s4648_s21, %s4648_s21 }
0x1b3b   :  { %p4655_p3 = por %p4654_p2, %p4653_p1 }
0x1b3d   :  { %p4656_p4 = pnand %p4655_p3, %p4649_p0 }
0x1c04   :  { %v3299_v48 = vpop.f32.mrb[30].mxu0 }
0x1c05   :  { %3397 = vrot.lane.b32.xlu0 %v3299_v48, %s5524_s29  ;;  %v4388_v49 = vpop.f32.mrb[31].mxu0  ;;  %v4033_v48 = vld [vmem:[%s5477_s12 + $0x68] sm:$0xff] }
0x1c08   :  { %v3375_v51 = vpop.f32.mrb[40].mxu1 }
0x1c09   :  { %3399 = vrot.lane.b32.xlu1 %v3375_v51, %s5524_s29  ;;  %v4393_v52 = vpop.f32.mrb[41].mxu1  ;;  %v4034_v51 = vld [vmem:[%s5477_s12 + $0x70] sm:$0xff] }
0x1c0a   :  { %v4035_v52 = vld [vmem:[%s5477_s12 + $0x78] sm:$0xff] }
0x1c0b   :  { %v4522_v53 = vpack.c.bf16 %v4035_v52, %v4034_v51 }
0x1c77   :  { %v3398_v59 = vpop.permute.xlu0 %3397 }
0x1c78   :  { %v3407_v24 = vsel %vm1569_vm3, %v3405_v57, %v3398_v59 }
0x1c79   :  { %4402 = vmatprep.mubr.msk.f32.mxu0 %vm67_vm0, %v3407_v24 }
0x1c7b   :  { %v3400_v0 = vpop.permute.xlu1 %3399 }
0x1c7c   :  { %v3408_v41 = vsel %vm1569_vm3, %v3406_v63, %v3400_v0 }
0x1c7d   :  { %4403 = vmatmul.mubr.msk.f32.vlgmr.msra.gmra.mrb[32].mxu0 %vm67_vm0, %v3408_v41 }
0x1c7e   :  { %4513 = vmatpush3.bf16.msra.mxu0 %v4510_v35 }
0x1c7f   :  { %4515 = vmatprep.subr.bf16.mxu0 %v4514_v47 }
0x1c82   :  { %4517 = vmatpush3.bf16.msra.mxu0 %v4514_v47 }
0x1d50   :  { %v4404_v1 = vpop.f32.mrb[32].mxu0 }
0x1d51   :  { %v3500_v2 = vadd.f32 %v4404_v1, %v4013_v58  ;;  %v3494_v4 = vpop.f32.mrb[33].mxu0 }
0x1d52   :  { %v3495_v5 = vadd.f32 %v4013_v58, %v3494_v4 }
0x1d53   :  { %v3504_v6 = vadd.f32 %v3500_v2, %v5144_v15 }
0x1d54   :  { %v3503_v43 = vadd.f32 %v3495_v5, %v5142_v14  ;;  %v4020_v14 = vld [vmem:[%s5475_s10 + $0x20] sm:$0xff] }
0x1d55   :  { %v3512_v60 = vsel %vm67_vm0, %v3504_v6, 0.0  ;;  %v4502_v18 = vpack.c.bf16 %v4021_v21, %v4020_v14 }
0x1d56   :  { %3513 = vadd.xlane.f32.xlu1 %v3512_v60  ;;  %v3509_v7 = vsel %vm67_vm0, %v3503_v43, 0.0 }
0x1d57   :  { %3510 = vadd.xlane.f32.xlu0 %v3509_v7  ;;  %4503 = vmatprep.subr.bf16.mxu1 %v4502_v18 }
0x1d58   :  { %4505 = vmatpush3.bf16.msra.mxu1 %v4502_v18 }
0x1d59   :  { %4507 = vmatprep.subr.bf16.mxu1 %v4506_v25 }
0x1d5c   :  { %4509 = vmatpush3.bf16.msra.mxu1 %v4506_v25 }
0x1de3   :  { %v3514_v8 = vpop.xlane.xlu1 %3513 }
0x1de4   :  { %v3516_v9 = vmul.f32 0.03125, %v3514_v8  ;;  %v3511_v10 = vpop.xlane.xlu0 %3510 }
0x1de5   :  { %v3515_v11 = vmul.f32 0.03125, %v3511_v10 }
0x1de6   :  { %v3518_v12 = vsub.f32 %v3504_v6, %v3516_v9 }
0x1de7   :  { %v3517_v13 = vsub.f32 %v3503_v43, %v3515_v11  ;;  %v4037_v11 = vld [vmem:[%s5478_s13 + $0x1] ss:$0 sm:$0xff] }
0x1de8   :  { %v3520_v17 = vmul.f32 %v3518_v12, %v3518_v12 }
0x1de9   :  { %v3519_v45 = vmul.f32 %v3517_v13, %v3517_v13 }
0x1dea   :  { %v3524_v15 = vsel %vm67_vm0, %v3520_v17, 0.0 }
0x1deb   :  { %v3521_v16 = vsel %vm67_vm0, %v3519_v45, 0.0 }
0x1dec   :  { %3522 = vadd.xlane.f32.xlu0 %v3521_v16 }
0x1df0   :  { %3525 = vadd.xlane.f32.xlu0 %v3524_v15 }
0x1e79   :  { %v3523_v26 = vpop.xlane.xlu0 %3522 }
0x1e7a   :  { %v3527_v27 = vmul.f32 0.03125, %v3523_v26 }
0x1e7c   :  { %v3529_v3 = vadd.f32 1e-12, %v3527_v27 }
0x1e7d   :  { %v3526_v20 = vpop.xlane.xlu0 %3525 }
0x1e7e   :  { %4632 = vrsqrt.f32 %v3529_v3  ;;  %v3528_v28 = vmul.f32 0.03125, %v3526_v20 }
0x1e80   :  { %v3530_v29 = vadd.f32 1e-12, %v3528_v28 }
0x1e82   :  { %4634 = vrsqrt.f32 %v3530_v29 }
0x1e88   :  { %v4633_v19 = vpop.eup %4632 }
0x1e89   :  { %v3533_v31 = vmul.f32 %v4633_v19, %v3517_v13  ;;  %v3811_v19 = vld [vmem:[%s5481_s16] sm:$0xff] }
0x1e8b   :  { %v3541_v32 = vmul.f32 %v4018_v30, %v3533_v31 }
0x1e8c   :  { %v4635_v34 = vpop.eup %4634 }
0x1e8d   :  { %v3534_v50 = vmul.f32 %v4635_v34, %v3518_v12  ;;  %v3549_v37 = vadd.f32 %v4019_v46, %v3541_v32  ;;  %v3814_v32 = vld [vmem:[%s5481_s16 + $0x18] sm:$0xff]  ;;  %v4712_v34 = vmov 0.0|0.0  }
0x1e8e   :  { %4526 = vmatprep.subr.bf16.mxu1 %v4712_v34 }
0x1e8f   :  { %v3542_v38 = vmul.f32 %v4018_v30, %v3534_v50  ;;  %4413 = vmatprep.mubr.msk.f32.mxu1 %vm67_vm0, %v3549_v37  ;;  %v3812_v30 = vld [vmem:[%s5481_s16 + $0x8] sm:$0xff] }
0x1e90   :  { %v4527_v31 = vpack.c.bf16 %v3812_v30, %v3811_v19 }
0x1e91   :  { %v3550_v40 = vadd.f32 %v4019_v46, %v3542_v38  ;;  %v3813_v46 = vld [vmem:[%s5481_s16 + $0x10] sm:$0xff] }
0x1e92   :  { %v4530_v50 = vpack.c.bf16 %v3814_v32, %v3813_v46 }
0x1e93   :  { %4414 = vmatmul.mubr.msk.f32.vlgmr.msra.gmra.mrb[42].mxu1 %vm67_vm0, %v3550_v40 }
0x1e94   :  { %4443 = vmatprep.mubr.msk.f32.mxu1 %vm4697_vm1, %v4696_v36  ;;  %v4032_v36 = vld [vmem:[%s5477_s12 + $0x60] sm:$0xff]  ;;  %4528 = vmatpush3.bf16.msra.mxu1 %v4527_v31 }
0x1e95   :  { %v4518_v49 = vpack.c.bf16 %v4033_v48, %v4032_v36  ;;  %4529 = vmatprep.subr.bf16.mxu1 %v4712_v34 }
0x1e97   :  { %4519 = vmatprep.subr.bf16.mxu0 %v4518_v49 }
0x1e98   :  { %4521 = vmatpush3.bf16.msra.mxu0 %v4518_v49  ;;  %4531 = vmatpush3.bf16.msra.mxu1 %v4530_v50  ;;  %v4043_v49 = vld [vmem:[%s5480_s15 + $0x1] ss:$0 sm:$0xff] }
0x1e99   :  { %4523 = vmatprep.subr.bf16.mxu0 %v4522_v53 }
0x1e9c   :  { %4525 = vmatpush3.bf16.msra.mxu0 %v4522_v53 }
0x1f66   :  { %v4415_v39 = vpop.f32.mrb[42].mxu1 }
0x1f67   :  { %v3642_v55 = vadd.f32 %v4415_v39, %v4025_v54  ;;  %v3636_v56 = vpop.f32.mrb[43].mxu1 }
0x1f68   :  { %v3637_v57 = vadd.f32 %v4025_v54, %v3636_v56 }
0x1f69   :  { %v3648_v59 = vmul.f32 0.044715, %v3642_v55  ;;  %v3646_v8 = vmul.f32 0.5, %v3642_v55 }
0x1f6a   :  { %v3647_v24 = vmul.f32 0.044715, %v3637_v57  ;;  %v3645_v60 = vmul.f32 0.5, %v3637_v57 }
0x1f6b   :  { %v3650_v61 = vmul.f32 %v3648_v59, %v3642_v55 }
0x1f6c   :  { %v3649_v63 = vmul.f32 %v3647_v24, %v3637_v57 }
0x1f6d   :  { %v3652_v0 = vmul.f32 %v3650_v61, %v3642_v55 }
0x1f6e   :  { %v3651_v41 = vmul.f32 %v3649_v63, %v3637_v57 }
0x1f6f   :  { %v3654_v58 = vadd.f32 %v3652_v0, %v3642_v55 }
0x1f70   :  { %v3653_v1 = vadd.f32 %v3651_v41, %v3637_v57 }
0x1f71   :  { %v3656_v2 = vmul.f32 0.7978846, %v3654_v58 }
0x1f72   :  { %v3655_v4 = vmul.f32 0.7978846, %v3653_v1 }
0x1f73   :  { %4636 = vtanh.f32 %v3656_v2 }
0x1f74   :  { %4638 = vtanh.f32 %v3655_v4 }
0x1f7d   :  { %v4637_v5 = vpop.eup %4636 }
0x1f7e   :  { %v4639_v6 = vpop.eup %4638  ;;  %v3660_v43 = vadd.f32 1.0, %v4637_v5 }
0x1f7f   :  { %v3659_v7 = vadd.f32 1.0, %v4639_v6 }
0x1f80   :  { %v3662_v10 = vmul.f32 %v3660_v43, %v3646_v8 }
0x1f81   :  { %v3661_v9 = vmul.f32 %v3659_v7, %v3645_v60 }
0x1f83   :  { %4432 = vmatprep.mubr.msk.f32.mxu0 %vm1835_vm5, %v3661_v9 }
0x1f84   :  { %4433 = vmatmul.mubr.msk.f32.vlgmr.msra.gmra.mrb[34].mxu0 %vm1835_vm5, %v3662_v10 }
0x2057   :  { %v4434_v12 = vpop.f32.mrb[34].mxu0 }
0x2058   :  { %v3758_v13 = vadd.f32 %v4434_v12, %v4037_v11  ;;  %v3752_v45 = vpop.f32.mrb[35].mxu0 }
0x2059   :  { %v3753_v16 = vadd.f32 %v4037_v11, %v3752_v45 }
0x205a   :  { %v3762_v17 = vadd.f32 %v3758_v13, %v3550_v40 }
0x205b   :  { %v3761_v15 = vadd.f32 %v3753_v16, %v3549_v37 }
0x205c   :  { %v3770_v14 = vsel %vm67_vm0, %v3762_v17, 0.0 }
0x205d   :  { %3771 = vadd.xlane.f32.xlu0 %v3770_v14  ;;  %v3767_v21 = vsel %vm67_vm0, %v3761_v15, 0.0 }
0x205e   :  { %3768 = vadd.xlane.f32.xlu1 %v3767_v21 }
0x20ea   :  { %v3772_v18 = vpop.xlane.xlu0 %3771 }
0x20eb   :  { %v3774_v23 = vmul.f32 0.03125, %v3772_v18  ;;  %v3769_v62 = vpop.xlane.xlu1 %3768 }
0x20ec   :  { %v3773_v25 = vmul.f32 0.03125, %v3769_v62 }
0x20ed   :  { %v3776_v26 = vsub.f32 %v3762_v17, %v3774_v23 }
0x20ee   :  { %v3775_v27 = vsub.f32 %v3761_v15, %v3773_v25 }
0x20ef   :  { %v3778_v3 = vmul.f32 %v3776_v26, %v3776_v26 }
0x20f0   :  { %v3777_v20 = vmul.f32 %v3775_v27, %v3775_v27 }
0x20f1   :  { %v3782_v28 = vsel %vm67_vm0, %v3778_v3, 0.0 }
0x20f2   :  { %3783 = vadd.xlane.f32.xlu0 %v3782_v28  ;;  %v3779_v29 = vsel %vm67_vm0, %v3777_v20, 0.0 }
0x20f3   :  { %3780 = vadd.xlane.f32.xlu1 %v3779_v29 }
0x217f   :  { %v3784_v37 = vpop.xlane.xlu0 %3783 }
0x2180   :  { %v3786_v38 = vmul.f32 0.03125, %v3784_v37  ;;  %v3781_v40 = vpop.xlane.xlu1 %3780 }
0x2181   :  { %v3785_v22 = vmul.f32 0.03125, %v3781_v40 }
0x2182   :  { %v3788_v42 = vadd.f32 1e-12, %v3786_v38 }
0x2183   :  { %v3787_v35 = vadd.f32 1e-12, %v3785_v22 }
0x2184   :  { %4640 = vrsqrt.f32 %v3788_v42 }
0x2185   :  { %4642 = vrsqrt.f32 %v3787_v35 }
0x218e   :  { %v4641_v33 = vpop.eup %4640 }
0x218f   :  { %v4643_v47 = vpop.eup %4642  ;;  %v3792_v36 = vmul.f32 %v4641_v33, %v3776_v26 }
0x2190   :  { %v3791_v48 = vmul.f32 %v4643_v47, %v3775_v27 }
0x2191   :  { %v3800_v51 = vmul.f32 %v4042_v44, %v3792_v36 }
0x2192   :  { %v3799_v52 = vmul.f32 %v4042_v44, %v3791_v48 }
0x2193   :  { %v3808_v53 = vadd.f32 %v4043_v49, %v3800_v51 }
0x2194   :  { %v3807_v54 = vadd.f32 %v4043_v49, %v3799_v52 }
0x2195   :  { %v3824_v39 = vrot.slane %v3808_v53, 7  ;;  %3810 = vst.msk [vmem:[#allocation4 + $0x8] sm:$0xff] %vm67_vm0, %v3808_v53 }
0x2196   :  { %3809 = vst.msk [vmem:[#allocation4] sm:$0xff] %vm67_vm0, %v3807_v54 }
0x2197   :  { %v3826_v55 = vsel %vm3825_vm6, %v3824_v39, %v3807_v54 }
0x2198   :  { %4444 = vmatmul.mubr.msk.f32.vlgmr.msra.gmra.mrb[44].mxu1 %vm67_vm0, %v3826_v55 }
0x2199   :  { %4659 = shalt.err (!%p4656_p4)
}
0x219a   :  { %s4660_s25 = scalar_lea.hbm %s5484_s19, 256 }
0x219b   :  { %p4661_p5 = scmp.ne.s32.totalorder %s5484_s19, %s4660_s25  ;;  %p4664_p6 = scmp.lt.u32.totalorder %s4660_s25, %s5484_s19 }
0x219d   :  { %p4666_p7 = pnand %p4664_p6, %p4661_p5 }
0x219f   :  { %4669 = shalt.err (!%p4666_p7)
}
0x21a0   :  { %s4714_s24 = smov 128   ;;  %v4044_v56 = vld [vmem:[%s5482_s17] ss:$0 sm:$0xff]  ;;  %s4715_s13 = smov [#allocation2]   ;;  %vm3900_vm7 = vcmask 254976  }
0x21a1   :  { %3923 = dma.vmem_to_hbm [thread:$0]  %s3918_s6, 256, %s5484_s19, [#allocation5], %s4714_s24, %s4714_s24, %s5522_s23  }
0x21a2   :  { %s3908_s26 = sshll.u32 %s4715_s13, 4  ;;  %s3909_s26 = int_to_ptr.vmem [resolvable:$true] %s3908_s26 }
0x21a3   :  { %s4670_s20 = scalar_lea.vmem %s3909_s26, 32  ;;  %p4675_p9 = scmp.lt.s32.totalorder %s3909_s26, %s3909_s26 }
0x21a4   :  { %p4671_p8 = scmp.ne.s32.totalorder %s3909_s26, %s4670_s20  ;;  %p4676_p10 = scmp.lt.s32.totalorder %s4670_s20, %s4670_s20 }
0x21a6   :  { %p4677_p11 = por %p4676_p10, %p4675_p9 }
0x21a8   :  { %p4678_p12 = pnand %p4677_p11, %p4671_p8 }
0x226b   :  { %v3895_v57 = vpop.f32.mrb[44].mxu1 }
0x226c   :  { %v3896_v59 = vadd.f32 %v4044_v56, %v3895_v57  ;;  %v4445_v24 = vpop.f32.mrb[45].mxu1 }
0x226e   :  { %4644 = vtanh.f32 %v3896_v59 }
0x2278   :  { %v4645_v61 = vpop.eup %4644 }
0x2279   :  { %3901 = vst.msk [vmem:[#allocation2] sm:$0x3] %vm3900_vm7, %v4645_v61 }
0x227a   :  { %4681 = shalt.err (!%p4678_p12)
}
0x227b   :  { %s4682_s17 = scalar_lea.hbm %s5483_s18, 32 }
0x227c   :  { %p4683_p13 = scmp.ne.s32.totalorder %s5483_s18, %s4682_s17  ;;  %p4686_p0 = scmp.lt.u32.totalorder %s4682_s17, %s5483_s18 }
0x227e   :  { %p4688_p1 = pnand %p4686_p0, %p4683_p13 }
0x2280   :  { %4691 = shalt.err (!%p4688_p1)
}
0x2281   :  { %3911 = dma.vmem_to_hbm [thread:$0]  %s3909_s26, 32, %s5483_s18, [#allocation3]  }
0x2282   :  { %4692 = dma.done.wait [#allocation3], 32  }
0x2283   :  { %4693 = vsyncadd [#allocation3], 4294967264 }
0x2284   :  { %4694 = dma.done.wait [#allocation5], 256  }
0x2285   :  { %4695 = vsyncadd [#allocation5], 4294967040 }
0x2286   :  { %3930 = vsyncpa [#allocation3], 1 }
0x2287   :  { %3931 = vsyncpa [#allocation5], 1 }

</bundles_post_ra>
